<compile_context>
chip_gen: v5e
topology: v5e:2x2
jax: 0.10.0
libtpu: 0.0.40
codegen_flags: <defaults>
</compile_context>

<pallas_src>
import functools
import math

import jax
import jax.numpy as jnp
from jax import lax
from jax.experimental import pallas as pl
from jax.experimental.pallas import tpu as pltpu  # noqa: F401  (TPU backend selection)

LN_EPS = 1e-5  # PyTorch nn.LayerNorm default


def _layer_norm(x, gamma, beta):
    # f32 VPU math (biased variance, matches torch)
    mu = jnp.mean(x, axis=-1, keepdims=True)
    var = jnp.mean((x - mu) ** 2, axis=-1, keepdims=True)
    return (x - mu) * lax.rsqrt(var + LN_EPS) * gamma + beta


def _gelu_exact(x):
    # matches torch.nn.functional.gelu (default, erf-based)
    return 0.5 * x * (1.0 + lax.erf(x * (1.0 / math.sqrt(2.0))))


def block_kernel(n_head,
                 x_ref,                   # (B, T, D) f32
                 g1_ref, b1_ref,          # ln1 gamma/beta, (1, D) f32
                 wqkv_ref,                # (D, 3D) bf16, 1/sqrt(hd) folded into Q cols
                 wproj_ref,               # (D, D) bf16
                 g2_ref, b2_ref,          # ln2 gamma/beta, (1, D) f32
                 w1_ref, bb1_ref,         # (D, 4D) bf16, (1, 4D) f32
                 w2_ref, bb2_ref,         # (4D, D) bf16, (1, D) f32
                 o_ref):                  # (B, T, D) f32
    B, T, D = x_ref.shape
    H = n_head
    hd = D // H
    R = B * T

    x = x_ref[...].reshape(R, D)          # (B*T, D) f32 — leading-dim merge only

    # ---------------- x = x + proj(attn(ln1(x))) ----------------
    h = _layer_norm(x, g1_ref[0], b1_ref[0])
    qkv = jnp.dot(h.astype(jnp.bfloat16), wqkv_ref[...],
                  preferred_element_type=jnp.float32)               # (R, 3D) f32 accum

    def to_heads(z):
        # (R, D) f32 -> (H*B, T, hd) bf16; batch index g = h*B + b.
        # Only 3-D (1,0,2) transposes + lane-preserving reshapes (proven to lower).
        z = z.reshape(R, H, hd)
        z = jnp.transpose(z, (1, 0, 2))                             # (H, R, hd)
        return z.reshape(H * B, T, hd).astype(jnp.bfloat16)

    qh = to_heads(qkv[:, 0 * D:1 * D])     # 1/sqrt(hd) already folded into W_qkv
    kh = to_heads(qkv[:, 1 * D:2 * D])
    vh = to_heads(qkv[:, 2 * D:3 * D])

    # Batched QK^T over the combined (head, batch) axis; K consumed untransposed.
    s = jnp.einsum('gqd,gkd->gqk', qh, kh,
                   preferred_element_type=jnp.float32)               # (H*B, T, T) f32
    s = s - jnp.max(s, axis=-1, keepdims=True)
    p = jnp.exp(s)
    p = p * pl.reciprocal(jnp.sum(p, axis=-1, keepdims=True), approx=False)

    yh = jnp.einsum('gqk,gkd->gqd', p.astype(jnp.bfloat16), vh,
                    preferred_element_type=jnp.float32)              # (H*B, T, hd) f32

    # Merge heads back to (R, D) with column order h*hd + d (torch layout).
    y = jnp.transpose(yh.reshape(H, R, hd), (1, 0, 2)).reshape(R, D)
    y = jnp.dot(y.astype(jnp.bfloat16), wproj_ref[...],
                preferred_element_type=jnp.float32)
    x = x + y

    # ---------------- x = x + ffwd(ln2(x)) ----------------
    h2 = _layer_norm(x, g2_ref[0], b2_ref[0])
    f = jnp.dot(h2.astype(jnp.bfloat16), w1_ref[...],
                preferred_element_type=jnp.float32) + bb1_ref[0]
    f = _gelu_exact(f)                                               # f32 elementwise
    f = jnp.dot(f.astype(jnp.bfloat16), w2_ref[...],
                preferred_element_type=jnp.float32) + bb2_ref[0]

    o_ref[...] = (x + f).reshape(B, T, D)


def prepare_params(raw, n_head):
    """One-time parameter prep (do this OUTSIDE the forward path):
       * matmul weights -> bf16 (MXU-native, half the HBM bytes),
       * fold 1/sqrt(head_dim) into the Q columns of W_qkv,
       * LN params and biases stay f32."""
    f32, bf16 = jnp.float32, jnp.bfloat16
    D = raw["w_qkv"].shape[0]
    hd = D // n_head
    scale = 1.0 / math.sqrt(hd)
    w_qkv = raw["w_qkv"].astype(f32).at[:, :D].multiply(scale)
    return {
        "ln1_g": raw["ln1_g"].astype(f32), "ln1_b": raw["ln1_b"].astype(f32),
        "w_qkv": w_qkv.astype(bf16),
        "w_proj": raw["w_proj"].astype(bf16),
        "ln2_g": raw["ln2_g"].astype(f32), "ln2_b": raw["ln2_b"].astype(f32),
        "w1": raw["w1"].astype(bf16), "b1": raw["b1"].astype(f32),
        "w2": raw["w2"].astype(bf16), "b2": raw["b2"].astype(f32),
    }


def transformer_block(x, prepared, n_head):
    """x: (B, T, D) float32. prepared: output of prepare_params()."""
    B, T, D = x.shape
    args = [
        prepared["ln1_g"], prepared["ln1_b"],
        prepared["w_qkv"], prepared["w_proj"],
        prepared["ln2_g"], prepared["ln2_b"],
        prepared["w1"], prepared["b1"],
        prepared["w2"], prepared["b2"],
    ]

    # Advisory cost hint for XLA's scheduler.
    flops = B * (24 * T * D * D + 4 * T * T * D)
    transcendentals = B * (n_head * T * T + 4 * T * D + 2 * T)
    bytes_accessed = 12 * D * D + 4 * 12 * D + 2 * 4 * B * T * D
    cost = pl.CostEstimate(flops=flops, transcendentals=transcendentals,
                           bytes_accessed=bytes_accessed)

    # No grid: the whole block is one kernel invocation; every operand is resident in
    # VMEM exactly once (total working set « 1 MiB at these shapes).
    return pl.pallas_call(
        functools.partial(block_kernel, n_head),
        out_shape=jax.ShapeDtypeStruct((B, T, D), jnp.float32),
        cost_estimate=cost,
    )(x, *args)


# ---------------- pure-JAX f32 reference (matches the PyTorch Block) ----------------
def reference_block(x, params, n_head):
    B, T, D = x.shape
    hd = D // n_head

    def ln(z, g, b):
        mu = jnp.mean(z, axis=-1, keepdims=True)
        var = jnp.mean((z - mu) ** 2, axis=-1, keepdims=True)
        return (z - mu) / jnp.sqrt(var + LN_EPS) * g + b

    h = ln(x, params["ln1_g"][0], params["ln1_b"][0])
    qkv = h @ params["w_qkv"]
    q, k, v = jnp.split(qkv, 3, axis=-1)
    q = q.reshape(B, T, n_head, hd).transpose(0, 2, 1, 3)
    k = k.reshape(B, T, n_head, hd).transpose(0, 2, 1, 3)
    v = v.reshape(B, T, n_head, hd).transpose(0, 2, 1, 3)
    s = jnp.einsum("bhqd,bhkd->bhqk", q, k) / math.sqrt(hd)
    p = jax.nn.softmax(s, axis=-1)
    y = jnp.einsum("bhqk,bhkd->bhqd", p, v)
    y = y.transpose(0, 2, 1, 3).reshape(B, T, D)
    y = y @ params["w_proj"]
    x = x + y
    h2 = ln(x, params["ln2_g"][0], params["ln2_b"][0])
    f = h2 @ params["w1"] + params["b1"][0]
    f = 0.5 * f * (1.0 + lax.erf(f / math.sqrt(2.0)))
    f = f @ params["w2"] + params["b2"][0]
    return x + f


if __name__ == "__main__":
    # Small config implied by the module: B=2, T=8 (context_length), d_model=32, n_head=4
    B, T, D, n_head = 2, 8, 32, 4

    key = jax.random.PRNGKey(0)
    ks = jax.random.split(key, 8)
    init = lambda k, shape: (0.02 * jax.random.normal(k, shape)).astype(jnp.float32)

    raw_params = {
        "ln1_g": jnp.ones((1, D), jnp.float32),
        "ln1_b": jnp.zeros((1, D), jnp.float32),
        "w_qkv": init(ks[0], (D, 3 * D)),
        "w_proj": init(ks[1], (D, D)),
        "ln2_g": jnp.ones((1, D), jnp.float32),
        "ln2_b": jnp.zeros((1, D), jnp.float32),
        "w1": init(ks[2], (D, 4 * D)),
        "b1": init(ks[3], (1, 4 * D)),
        "w2": init(ks[4], (4 * D, D)),
        "b2": init(ks[5], (1, D)),
    }

    x = jax.random.normal(ks[6], (B, T, D), dtype=jnp.float32)

    # One-time parameter preparation (hoisted out of the forward path).
    prepared = jax.tree_util.tree_map(jax.block_until_ready,
                                      prepare_params(raw_params, n_head))

    out = transformer_block(x, prepared, n_head)
    out = jax.block_until_ready(out)

    ref = reference_block(x, raw_params, n_head)
    assert out.shape == (B, T, D)
    # bf16 MXU operands vs. the f32 reference -> loosened tolerance.
    assert jnp.allclose(out, ref, atol=2e-2, rtol=2e-2), float(jnp.max(jnp.abs(out - ref)))

    print("KERNEL_OK")
</pallas_src>

<mosaic_0001>
module attributes {stable_mosaic.version = 11 : i64} {
  func.func @block_kernel(%arg0: memref<2x8x32xf32, #tpu.memory_space<vmem>>, %arg1: memref<1x32xf32, #tpu.memory_space<vmem>>, %arg2: memref<1x32xf32, #tpu.memory_space<vmem>>, %arg3: memref<32x96xbf16, #tpu.memory_space<vmem>>, %arg4: memref<32x32xbf16, #tpu.memory_space<vmem>>, %arg5: memref<1x32xf32, #tpu.memory_space<vmem>>, %arg6: memref<1x32xf32, #tpu.memory_space<vmem>>, %arg7: memref<32x128xbf16, #tpu.memory_space<vmem>>, %arg8: memref<1x128xf32, #tpu.memory_space<vmem>>, %arg9: memref<128x32xbf16, #tpu.memory_space<vmem>>, %arg10: memref<1x32xf32, #tpu.memory_space<vmem>>, %arg11: memref<2x8x32xf32, #tpu.memory_space<vmem>>) attributes {dimension_semantics = [], scalar_prefetch = 0 : i64, scratch_operands = 0 : i64, tpu.core_type = #tpu.core_type<tc>} {
    %c0 = arith.constant 0 : index
    %c0_0 = arith.constant 0 : index
    %c0_1 = arith.constant 0 : index
    %0 = vector.load %arg0[%c0, %c0_0, %c0_1] : memref<2x8x32xf32, #tpu.memory_space<vmem>>, vector<2x8x32xf32>
    %1 = vector.shape_cast %0 : vector<2x8x32xf32> to vector<16x32xf32>
    %c0_2 = arith.constant 0 : index
    %c0_3 = arith.constant 0 : index
    %2 = vector.load %arg1[%c0_2, %c0_3] : memref<1x32xf32, #tpu.memory_space<vmem>>, vector<1x32xf32>
    %3 = vector.shape_cast %2 : vector<1x32xf32> to vector<32xf32>
    %c0_4 = arith.constant 0 : index
    %c0_5 = arith.constant 0 : index
    %4 = vector.load %arg2[%c0_4, %c0_5] : memref<1x32xf32, #tpu.memory_space<vmem>>, vector<1x32xf32>
    %5 = vector.shape_cast %4 : vector<1x32xf32> to vector<32xf32>
    %cst = arith.constant dense<0.000000e+00> : vector<16xf32>
    %6 = vector.multi_reduction <add>, %1, %cst [1] : vector<16x32xf32> to vector<16xf32>
    %7 = vector.shape_cast %6 : vector<16xf32> to vector<16x1xf32>
    %cst_6 = arith.constant 3.200000e+01 : f32
    %8 = vector.broadcast %cst_6 : f32 to vector<16x1xf32>
    %9 = arith.divf %7, %8 : vector<16x1xf32>
    %10 = vector.broadcast %9 : vector<16x1xf32> to vector<16x32xf32>
    %11 = arith.subf %1, %10 : vector<16x32xf32>
    %12 = arith.mulf %11, %11 : vector<16x32xf32>
    %cst_7 = arith.constant dense<0.000000e+00> : vector<16xf32>
    %13 = vector.multi_reduction <add>, %12, %cst_7 [1] : vector<16x32xf32> to vector<16xf32>
    %14 = vector.shape_cast %13 : vector<16xf32> to vector<16x1xf32>
    %cst_8 = arith.constant 3.200000e+01 : f32
    %15 = vector.broadcast %cst_8 : f32 to vector<16x1xf32>
    %16 = arith.divf %14, %15 : vector<16x1xf32>
    %17 = vector.broadcast %9 : vector<16x1xf32> to vector<16x32xf32>
    %18 = arith.subf %1, %17 : vector<16x32xf32>
    %cst_9 = arith.constant 9.99999974E-6 : f32
    %19 = vector.broadcast %cst_9 : f32 to vector<16x1xf32>
    %20 = arith.addf %16, %19 : vector<16x1xf32>
    %21 = math.rsqrt %20 : vector<16x1xf32>
    %22 = vector.broadcast %21 : vector<16x1xf32> to vector<16x32xf32>
    %23 = arith.mulf %18, %22 : vector<16x32xf32>
    %24 = vector.shape_cast %3 : vector<32xf32> to vector<1x32xf32>
    %25 = vector.broadcast %24 : vector<1x32xf32> to vector<16x32xf32>
    %26 = arith.mulf %23, %25 : vector<16x32xf32>
    %27 = vector.shape_cast %5 : vector<32xf32> to vector<1x32xf32>
    %28 = vector.broadcast %27 : vector<1x32xf32> to vector<16x32xf32>
    %29 = arith.addf %26, %28 : vector<16x32xf32>
    %30 = arith.truncf %29 : vector<16x32xf32> to vector<16x32xbf16>
    %c0_10 = arith.constant 0 : index
    %c0_11 = arith.constant 0 : index
    %31 = vector.load %arg3[%c0_10, %c0_11] : memref<32x96xbf16, #tpu.memory_space<vmem>>, vector<32x96xbf16>
    %cst_12 = arith.constant dense<0.000000e+00> : vector<16x96xf32>
    %32 = tpu.matmul %30, %31, %cst_12 {dimension_numbers = #tpu.dot_dimension_numbers<[1], [0], [0], [1], [0, 0, 1, 1], [], []>} : vector<16x32xbf16>, vector<32x96xbf16>, vector<16x96xf32> -> vector<16x96xf32>
    %33 = vector.extract_strided_slice %32 {offsets = [0, 0], sizes = [16, 32], strides = [1, 1]} : vector<16x96xf32> to vector<16x32xf32>
    %34 = vector.shape_cast %33 : vector<16x32xf32> to vector<16x4x8xf32>
    %35 = tpu.transpose %34, [1, 0, 2] : vector<16x4x8xf32> -> vector<4x16x8xf32>
    %36 = vector.shape_cast %35 : vector<4x16x8xf32> to vector<8x8x8xf32>
    %37 = arith.truncf %36 : vector<8x8x8xf32> to vector<8x8x8xbf16>
    %38 = vector.extract_strided_slice %32 {offsets = [0, 32], sizes = [16, 32], strides = [1, 1]} : vector<16x96xf32> to vector<16x32xf32>
    %39 = vector.shape_cast %38 : vector<16x32xf32> to vector<16x4x8xf32>
    %40 = tpu.transpose %39, [1, 0, 2] : vector<16x4x8xf32> -> vector<4x16x8xf32>
    %41 = vector.shape_cast %40 : vector<4x16x8xf32> to vector<8x8x8xf32>
    %42 = arith.truncf %41 : vector<8x8x8xf32> to vector<8x8x8xbf16>
    %43 = vector.extract_strided_slice %32 {offsets = [0, 64], sizes = [16, 32], strides = [1, 1]} : vector<16x96xf32> to vector<16x32xf32>
    %44 = vector.shape_cast %43 : vector<16x32xf32> to vector<16x4x8xf32>
    %45 = tpu.transpose %44, [1, 0, 2] : vector<16x4x8xf32> -> vector<4x16x8xf32>
    %46 = vector.shape_cast %45 : vector<4x16x8xf32> to vector<8x8x8xf32>
    %47 = arith.truncf %46 : vector<8x8x8xf32> to vector<8x8x8xbf16>
    "tpu.trace_start"() <{level = 10 : i32, message = "gqd,gkd->gqk"}> : () -> ()
    %cst_13 = arith.constant dense<0.000000e+00> : vector<8x8x8xf32>
    %48 = tpu.matmul %37, %42, %cst_13 {dimension_numbers = #tpu.dot_dimension_numbers<[2], [2], [1], [1], [0, 0, 0, 1, 1, 1], [0], [0]>} : vector<8x8x8xbf16>, vector<8x8x8xbf16>, vector<8x8x8xf32> -> vector<8x8x8xf32>
    "tpu.trace_stop"() : () -> ()
    %cst_14 = arith.constant dense<0xFF800000> : vector<8x8xf32>
    %49 = vector.multi_reduction <maximumf>, %48, %cst_14 [2] : vector<8x8x8xf32> to vector<8x8xf32>
    %50 = vector.shape_cast %49 : vector<8x8xf32> to vector<8x8x1xf32>
    %51 = vector.broadcast %50 : vector<8x8x1xf32> to vector<8x8x8xf32>
    %52 = arith.subf %48, %51 : vector<8x8x8xf32>
    %53 = math.exp %52 : vector<8x8x8xf32>
    %cst_15 = arith.constant dense<0.000000e+00> : vector<8x8xf32>
    %54 = vector.multi_reduction <add>, %53, %cst_15 [2] : vector<8x8x8xf32> to vector<8x8xf32>
    %55 = vector.shape_cast %54 : vector<8x8xf32> to vector<8x8x1xf32>
    %56 = tpu.reciprocal %55 : vector<8x8x1xf32> -> vector<8x8x1xf32>
    %57 = vector.broadcast %56 : vector<8x8x1xf32> to vector<8x8x8xf32>
    %58 = arith.mulf %53, %57 : vector<8x8x8xf32>
    %59 = arith.truncf %58 : vector<8x8x8xf32> to vector<8x8x8xbf16>
    "tpu.trace_start"() <{level = 10 : i32, message = "gqk,gkd->gqd"}> : () -> ()
    %cst_16 = arith.constant dense<0.000000e+00> : vector<8x8x8xf32>
    %60 = tpu.matmul %59, %47, %cst_16 {dimension_numbers = #tpu.dot_dimension_numbers<[2], [1], [1], [2], [0, 0, 0, 1, 1, 2], [0], [0]>} : vector<8x8x8xbf16>, vector<8x8x8xbf16>, vector<8x8x8xf32> -> vector<8x8x8xf32>
    "tpu.trace_stop"() : () -> ()
    %61 = vector.shape_cast %60 : vector<8x8x8xf32> to vector<4x16x8xf32>
    %62 = tpu.transpose %61, [1, 0, 2] : vector<4x16x8xf32> -> vector<16x4x8xf32>
    %63 = vector.shape_cast %62 : vector<16x4x8xf32> to vector<16x32xf32>
    %64 = arith.truncf %63 : vector<16x32xf32> to vector<16x32xbf16>
    %c0_17 = arith.constant 0 : index
    %c0_18 = arith.constant 0 : index
    %65 = vector.load %arg4[%c0_17, %c0_18] : memref<32x32xbf16, #tpu.memory_space<vmem>>, vector<32x32xbf16>
    %cst_19 = arith.constant dense<0.000000e+00> : vector<16x32xf32>
    %66 = tpu.matmul %64, %65, %cst_19 {dimension_numbers = #tpu.dot_dimension_numbers<[1], [0], [0], [1], [0, 0, 1, 1], [], []>} : vector<16x32xbf16>, vector<32x32xbf16>, vector<16x32xf32> -> vector<16x32xf32>
    %67 = arith.addf %1, %66 : vector<16x32xf32>
    %c0_20 = arith.constant 0 : index
    %c0_21 = arith.constant 0 : index
    %68 = vector.load %arg5[%c0_20, %c0_21] : memref<1x32xf32, #tpu.memory_space<vmem>>, vector<1x32xf32>
    %69 = vector.shape_cast %68 : vector<1x32xf32> to vector<32xf32>
    %c0_22 = arith.constant 0 : index
    %c0_23 = arith.constant 0 : index
    %70 = vector.load %arg6[%c0_22, %c0_23] : memref<1x32xf32, #tpu.memory_space<vmem>>, vector<1x32xf32>
    %71 = vector.shape_cast %70 : vector<1x32xf32> to vector<32xf32>
    %cst_24 = arith.constant dense<0.000000e+00> : vector<16xf32>
    %72 = vector.multi_reduction <add>, %67, %cst_24 [1] : vector<16x32xf32> to vector<16xf32>
    %73 = vector.shape_cast %72 : vector<16xf32> to vector<16x1xf32>
    %cst_25 = arith.constant 3.200000e+01 : f32
    %74 = vector.broadcast %cst_25 : f32 to vector<16x1xf32>
    %75 = arith.divf %73, %74 : vector<16x1xf32>
    %76 = vector.broadcast %75 : vector<16x1xf32> to vector<16x32xf32>
    %77 = arith.subf %67, %76 : vector<16x32xf32>
    %78 = arith.mulf %77, %77 : vector<16x32xf32>
    %cst_26 = arith.constant dense<0.000000e+00> : vector<16xf32>
    %79 = vector.multi_reduction <add>, %78, %cst_26 [1] : vector<16x32xf32> to vector<16xf32>
    %80 = vector.shape_cast %79 : vector<16xf32> to vector<16x1xf32>
    %cst_27 = arith.constant 3.200000e+01 : f32
    %81 = vector.broadcast %cst_27 : f32 to vector<16x1xf32>
    %82 = arith.divf %80, %81 : vector<16x1xf32>
    %83 = vector.broadcast %75 : vector<16x1xf32> to vector<16x32xf32>
    %84 = arith.subf %67, %83 : vector<16x32xf32>
    %cst_28 = arith.constant 9.99999974E-6 : f32
    %85 = vector.broadcast %cst_28 : f32 to vector<16x1xf32>
    %86 = arith.addf %82, %85 : vector<16x1xf32>
    %87 = math.rsqrt %86 : vector<16x1xf32>
    %88 = vector.broadcast %87 : vector<16x1xf32> to vector<16x32xf32>
    %89 = arith.mulf %84, %88 : vector<16x32xf32>
    %90 = vector.shape_cast %69 : vector<32xf32> to vector<1x32xf32>
    %91 = vector.broadcast %90 : vector<1x32xf32> to vector<16x32xf32>
    %92 = arith.mulf %89, %91 : vector<16x32xf32>
    %93 = vector.shape_cast %71 : vector<32xf32> to vector<1x32xf32>
    %94 = vector.broadcast %93 : vector<1x32xf32> to vector<16x32xf32>
    %95 = arith.addf %92, %94 : vector<16x32xf32>
    %96 = arith.truncf %95 : vector<16x32xf32> to vector<16x32xbf16>
    %c0_29 = arith.constant 0 : index
    %c0_30 = arith.constant 0 : index
    %97 = vector.load %arg7[%c0_29, %c0_30] : memref<32x128xbf16, #tpu.memory_space<vmem>>, vector<32x128xbf16>
    %cst_31 = arith.constant dense<0.000000e+00> : vector<16x128xf32>
    %98 = tpu.matmul %96, %97, %cst_31 {dimension_numbers = #tpu.dot_dimension_numbers<[1], [0], [0], [1], [0, 0, 1, 1], [], []>} : vector<16x32xbf16>, vector<32x128xbf16>, vector<16x128xf32> -> vector<16x128xf32>
    %c0_32 = arith.constant 0 : index
    %c0_33 = arith.constant 0 : index
    %99 = vector.load %arg8[%c0_32, %c0_33] : memref<1x128xf32, #tpu.memory_space<vmem>>, vector<1x128xf32>
    %100 = vector.shape_cast %99 : vector<1x128xf32> to vector<128xf32>
    %101 = vector.shape_cast %100 : vector<128xf32> to vector<1x128xf32>
    %102 = vector.broadcast %101 : vector<1x128xf32> to vector<16x128xf32>
    %103 = arith.addf %98, %102 : vector<16x128xf32>
    %cst_34 = arith.constant 5.000000e-01 : f32
    %104 = vector.broadcast %cst_34 : f32 to vector<16x128xf32>
    %105 = arith.mulf %104, %103 : vector<16x128xf32>
    %cst_35 = arith.constant 0.707106769 : f32
    %106 = vector.broadcast %cst_35 : f32 to vector<16x128xf32>
    %107 = arith.mulf %103, %106 : vector<16x128xf32>
    %108 = math.erf %107 : vector<16x128xf32>
    %cst_36 = arith.constant 1.000000e+00 : f32
    %109 = vector.broadcast %cst_36 : f32 to vector<16x128xf32>
    %110 = arith.addf %109, %108 : vector<16x128xf32>
    %111 = arith.mulf %105, %110 : vector<16x128xf32>
    %112 = arith.truncf %111 : vector<16x128xf32> to vector<16x128xbf16>
    %c0_37 = arith.constant 0 : index
    %c0_38 = arith.constant 0 : index
    %113 = vector.load %arg9[%c0_37, %c0_38] : memref<128x32xbf16, #tpu.memory_space<vmem>>, vector<128x32xbf16>
    %cst_39 = arith.constant dense<0.000000e+00> : vector<16x32xf32>
    %114 = tpu.matmul %112, %113, %cst_39 {dimension_numbers = #tpu.dot_dimension_numbers<[1], [0], [0], [1], [0, 0, 1, 1], [], []>} : vector<16x128xbf16>, vector<128x32xbf16>, vector<16x32xf32> -> vector<16x32xf32>
    %c0_40 = arith.constant 0 : index
    %c0_41 = arith.constant 0 : index
    %115 = vector.load %arg10[%c0_40, %c0_41] : memref<1x32xf32, #tpu.memory_space<vmem>>, vector<1x32xf32>
    %116 = vector.shape_cast %115 : vector<1x32xf32> to vector<32xf32>
    %117 = vector.shape_cast %116 : vector<32xf32> to vector<1x32xf32>
    %118 = vector.broadcast %117 : vector<1x32xf32> to vector<16x32xf32>
    %119 = arith.addf %114, %118 : vector<16x32xf32>
    %120 = arith.addf %67, %119 : vector<16x32xf32>
    %121 = vector.shape_cast %120 : vector<16x32xf32> to vector<2x8x32xf32>
    %c0_42 = arith.constant 0 : index
    %c0_43 = arith.constant 0 : index
    %c0_44 = arith.constant 0 : index
    %122 = vector.load %arg11[%c0_42, %c0_43, %c0_44] : memref<2x8x32xf32, #tpu.memory_space<vmem>>, vector<2x8x32xf32>
    tpu.vector_store %arg11[%c0_42, %c0_43, %c0_44], %121 {strides = array<i32>} : memref<2x8x32xf32, #tpu.memory_space<vmem>>, vector<2x8x32xf32>,
    return
  }
}

</mosaic_0001>

<bundles_post_ra>
// kernel: tpu_custom_call.1
= control target key start
LH: loop header
LB: loop body
LE: loop exit
PB: predicated region body
PF: predicated region fallthrough
CT: control target
= control target key end

     0   :  { %vm44_vm0 = vcmask 261120   ;;  %s2921_s0 = inlined_call_operand.vmem [shape: f32[2,8,32], index: 0, kind: input, shape index: {}]   ;;  %s2922_s1 = inlined_call_operand.vmem [shape: f32[1,32], index: 1, kind: input, shape index: {}]   ;;  %s2923_s2 = inlined_call_operand.vmem [shape: f32[1,32], index: 2, kind: input, shape index: {}]   ;;  %s2924_s3 = inlined_call_operand.vmem [shape: bf16[32,96], index: 3, kind: input, shape index: {}]   ;;  %s2925_s4 = inlined_call_operand.vmem [shape: bf16[32,32], index: 4, kind: input, shape index: {}]   ;;  %s2926_s5 = inlined_call_operand.vmem [shape: f32[1,32], index: 5, kind: input, shape index: {}]   ;;  %s2927_s6 = inlined_call_operand.vmem [shape: f32[1,32], index: 6, kind: input, shape index: {}]   ;;  %s2928_s7 = inlined_call_operand.vmem [shape: bf16[32,128], index: 7, kind: input, shape index: {}]   ;;  %s2929_s8 = inlined_call_operand.vmem [shape: f32[1,128], index: 8, kind: input, shape index: {}]   ;;  %s2930_s9 = inlined_call_operand.vmem [shape: bf16[128,32], index: 9, kind: input, shape index: {}]   ;;  %s2931_s10 = inlined_call_operand.vmem [shape: f32[1,32], index: 10, kind: input, shape index: {}]   ;;  %s2932_s11 = inlined_call_operand.hbm [shape: f32[2,8,32], index: 11, kind: output, shape index: {}]  }
   0x1   :  { %v40_v0 = vld [vmem:[%s2921_s0] sm:$0xff] }
   0x2   :  { %v45_v1 = vsel %vm44_vm0, %v40_v0, 0.0 }
   0x3   :  { %46 = vadd.xlane.f32.xlu0 %v45_v1 }
   0x4   :  { %16 = vsyncpa [#allocation3], 0  ;;  %v41_v2 = vld [vmem:[%s2921_s0 + $0x8] sm:$0xff]  ;;  %v2223_v4 = vmov 32.0   ;;  %v2051_v23 = vld [vmem:[%s2924_s3] sm:$0xff]  ;;  %s2224_s28 = smov 120  }
   0x5   :  { %v48_v3 = vsel %vm44_vm0, %v41_v2, 0.0  ;;  %2149 = vrcp.f32 %v2223_v4  ;;  %v2052_v21 = vld [vmem:[%s2924_s3 + $0x8] sm:$0xff]  ;;  %v2143_v42 = vld [vmem:[%s2922_s1] ss:$0 sm:$0xff]  ;;  %s2225_s1 = smov 104   ;;  %s2226_s29 = smov 112  }
   0x6   :  { %132 = vmatpush.bf16.msra.mxu0 %v2052_v21  ;;  %v2144_v47 = vld [vmem:[%s2923_s2] ss:$0 sm:$0xff]  ;;  %s2227_s2 = smov 96   ;;  %v2228_v60 = vmov 1983009808   ;;  %vm161_vm8 = vcmask 1047556  }
   0x7   :  { %v166_v61 = vunpack.c.l.s4 %v2228_v60  ;;  %s2230_s30 = smov 64   ;;  %vm893_vm9 = vcmask 64512   ;;  %vm1249_vm10 = vcmask 1043456   ;;  %s2231_s12 = smov 16  }
   0x8   :  { %s2232_s13 = smov 24   ;;  %s2233_s14 = smov 8  }
   0x9   :  { %v2335_v63 = vunpack.c.0.s8 %v166_v61  ;;  %s1962_s23 = sshll.u32 %s2932_s11, 4  ;;  %s2234_s24 = smov [#allocation2]   ;;  %s1963_s23 = int_to_ptr.hbm [resolvable:$true] %s1962_s23 }
   0xa   :  { %133 = vmatpush.bf16.msra.mxu0 %v2051_v23 }
   0xb   :  { %49 = vadd.xlane.f32.xlu0 %v48_v3  ;;  %v2150_v5 = vpop.eup %2149 }
   0xc   :  { %v52_v6 = vmul.f32 32.0, %v2150_v5  ;;  %vm56_vm1 = vweird.f32 %v2150_v5 }
   0xe   :  { %v53_v7 = vsub.f32 1.0, %v52_v6 }
  0x10   :  { %v54_v8 = vmul.f32 %v2150_v5, %v53_v7 }
  0x12   :  { %v55_v9 = vadd.f32 %v2150_v5, %v54_v8  ;;  %v2229_v8 = vmov 1934713408  }
  0x14   :  { %v2304_v10 = vsel %vm56_vm1, %v2150_v5, %v55_v9  ;;  %v190_v9 = vunpack.c.l.s4 %v2229_v8 }
  0x16   :  { %v2345_v21 = vunpack.c.0.s8 %v190_v9 }
  0x76   :  { %v47_v11 = vpop.xlane.xlu0 %46 }
  0x77   :  { %v58_v12 = vmul.f32 %v2304_v10, %v47_v11 }
  0x79   :  { %v60_v13 = vsub.f32 %v40_v0, %v58_v12 }
  0x7b   :  { %v62_v14 = vmul.f32 %v60_v13, %v60_v13 }
  0x7d   :  { %v64_v15 = vsel %vm44_vm0, %v62_v14, 0.0 }
  0x7e   :  { %65 = vadd.xlane.f32.xlu1 %v64_v15  ;;  %v50_v16 = vpop.xlane.xlu0 %49 }
  0x7f   :  { %v59_v17 = vmul.f32 %v2304_v10, %v50_v16 }
  0x81   :  { %v61_v18 = vsub.f32 %v41_v2, %v59_v17 }
  0x83   :  { %v63_v19 = vmul.f32 %v61_v18, %v61_v18 }
  0x85   :  { %v67_v20 = vsel %vm44_vm0, %v63_v19, 0.0 }
  0x86   :  { %68 = vadd.xlane.f32.xlu1 %v67_v20 }
  0xf1   :  { %v66_v22 = vpop.xlane.xlu1 %65 }
  0xf2   :  { %v70_v24 = vmul.f32 %v66_v22, %v2304_v10 }
  0xf4   :  { %v72_v25 = vadd.f32 1e-05, %v70_v24 }
  0xf6   :  { %2151 = vrsqrt.f32 %v72_v25  ;;  %vm80_vm3 = vweird.f32 %v72_v25 }
  0xf9   :  { %v69_v26 = vpop.xlane.xlu1 %68 }
  0xfa   :  { %v71_v27 = vmul.f32 %v69_v26, %v2304_v10 }
  0xfc   :  { %v2152_v28 = vpop.eup %2151  ;;  %v73_v29 = vadd.f32 1e-05, %v71_v27 }
  0xfd   :  { %v75_v30 = vmul.f32 %v2152_v28, %v72_v25  ;;  %vm81_vm2 = vweird.f32 %v2152_v28 }
  0xfe   :  { %2153 = vrsqrt.f32 %v73_v29  ;;  %vm82_vm4 = vmor %vm80_vm3, %vm81_vm2  ;;  %vm90_vm6 = vweird.f32 %v73_v29 }
  0xff   :  { %v76_v31 = vmul.f32 %v2152_v28, %v75_v30 }
 0x101   :  { %v77_v32 = vmul.f32 0.5, %v76_v31 }
 0x103   :  { %v78_v33 = vsub.f32 1.5, %v77_v32 }
 0x104   :  { %v2154_v34 = vpop.eup %2153 }
 0x105   :  { %v79_v35 = vmul.f32 %v2152_v28, %v78_v33  ;;  %v85_v36 = vmul.f32 %v2154_v34, %v73_v29  ;;  %vm91_vm5 = vweird.f32 %v2154_v34 }
 0x106   :  { %vm92_vm7 = vmor %vm90_vm6, %vm91_vm5 }
 0x107   :  { %v86_v37 = vmul.f32 %v2154_v34, %v85_v36  ;;  %v83_v38 = vsel %vm82_vm4, %v2152_v28, %v79_v35 }
 0x108   :  { %v94_v41 = vmul.f32 %v83_v38, %v60_v13 }
 0x109   :  { %v87_v39 = vmul.f32 0.5, %v86_v37 }
 0x10a   :  { %v99_v46 = vmul.f32 %v2143_v42, %v94_v41 }
 0x10b   :  { %v88_v40 = vsub.f32 1.5, %v87_v39 }
 0x10c   :  { %v104_v49 = vadd.f32 %v2144_v47, %v99_v46 }
 0x10d   :  { %v89_v43 = vmul.f32 %v2154_v34, %v88_v40 }
 0x10f   :  { %v93_v44 = vsel %vm92_vm7, %v2154_v34, %v89_v43 }
 0x110   :  { %v95_v45 = vmul.f32 %v93_v44, %v61_v18 }
 0x112   :  { %v100_v48 = vmul.f32 %v2143_v42, %v95_v45 }
 0x114   :  { %v105_v50 = vadd.f32 %v2144_v47, %v100_v48 }
 0x116   :  { %v106_v51 = vpack.c.bf16 %v105_v50, %v104_v49 }
 0x118   :  { %1982 = vmatmul.msk.bf16.vlgmr.msra.gmra.mxu0 %vm44_vm0, %v106_v51 }
 0x195   :  { %v135_v52 = vpop.f32.mrf.mxu0 }
 0x196   :  { %142 = vrot.lane.b32.xlu1 %v135_v52, %s2224_s28  ;;  %v163_v62 = vrot.slane %v135_v52, 4 }
 0x19d   :  { %v137_v53 = vpop.f32.mrf.mxu0 }
 0x19e   :  { %144 = vrot.lane.b32.xlu2 %v137_v53, %s2224_s28  ;;  %v2083_v54 = vpack.i.bf16 %v137_v53, %v135_v52  ;;  %v219_v3 = vrot.slane %v137_v53, 4 }
 0x1a0   :  { %2084 = vrot.lane.b32.xlu0 %v2083_v54, %s2225_s1 }
 0x1a6   :  { %2079 = vrot.lane.b32.xlu2 %v2083_v54, %s2226_s29 }
 0x1f8   :  { %v145_v55 = vpop.permute.xlu2 %144 }
 0x1f9   :  { %v2325_v56 = vpack.i.bf16 %v145_v55, %v137_v53  ;;  %v231_v12 = vrot.slane %v145_v55, 4 }
 0x1fb   :  { %2089 = vrot.lane.b32.xlu2 %v2325_v56, %s2227_s2 }
 0x200   :  { %v2329_v57 = vpop.permute.xlu2 %2079 }
 0x201   :  { %v2082_v58 = vunpack.i.h.bf16 %v2329_v57  ;;  %v2081_v59 = vunpack.i.l.bf16 %v2329_v57 }
 0x203   :  { %2094 = vrot.lane.b32.xlu2 %v2329_v57, %s2227_s2  ;;  %v160_v0 = vrot.slane %v2081_v59, 4  ;;  %v217_v1 = vrot.slane %v2082_v58, 4  ;;  %v164_v2 = vsel %vm161_vm8, %v2081_v59, %v163_v62  ;;  %v220_v4 = vsel %vm161_vm8, %v2082_v58, %v219_v3 }
 0x204   :  { %v172_v6 = vperm.slane %v164_v2, %v2335_v63  ;;  %v228_v13 = vperm.slane %v220_v4, %v2335_v63 }
 0x205   :  { %v162_v5 = vsel %vm161_vm8, %v160_v0, %v135_v52  ;;  %v218_v11 = vsel %vm161_vm8, %v217_v1, %v137_v53 }
 0x206   :  { %v168_v15 = vperm.slane %v162_v5, %v2335_v63  ;;  %v224_v19 = vperm.slane %v218_v11, %v2335_v63  ;;  %v199_v20 = vrot.slane %v172_v6, 4  ;;  %v255_v31 = vrot.slane %v228_v13, 4 }
 0x208   :  { %v143_v7 = vpop.permute.xlu1 %142  ;;  %v187_v30 = vrot.slane %v168_v15, 4  ;;  %v243_v38 = vrot.slane %v224_v19, 4 }
 0x209   :  { %v175_v16 = vrot.slane %v143_v7, 4 }
 0x212   :  { %v2085_v14 = vpop.permute.xlu0 %2084 }
 0x213   :  { %v2087_v17 = vunpack.i.h.bf16 %v2085_v14  ;;  %v2086_v18 = vunpack.i.l.bf16 %v2085_v14 }
 0x215   :  { %v229_v22 = vrot.slane %v2087_v17, 4  ;;  %v173_v23 = vrot.slane %v2086_v18, 4  ;;  %v176_v24 = vsel %vm161_vm8, %v2086_v18, %v175_v16  ;;  %v232_v25 = vsel %vm161_vm8, %v2087_v17, %v231_v12 }
 0x216   :  { %v184_v26 = vperm.slane %v176_v24, %v2335_v63  ;;  %v240_v27 = vperm.slane %v232_v25, %v2335_v63  ;;  %v2351_v28 = vpack.i.bf16 %v143_v7, %v2087_v17  ;;  %v2353_v29 = vpack.i.bf16 %v2086_v18, %v135_v52 }
 0x217   :  { %v174_v32 = vsel %vm161_vm8, %v173_v23, %v143_v7  ;;  %v230_v33 = vsel %vm161_vm8, %v229_v22, %v145_v55 }
 0x218   :  { %v180_v34 = vperm.slane %v174_v32, %v2335_v63  ;;  %v197_v35 = vrot.slane %v184_v26, 4  ;;  %v200_v36 = vsel %vm161_vm8, %v184_v26, %v199_v20  ;;  %v236_v37 = vperm.slane %v230_v33, %v2335_v63  ;;  %2104 = vrot.lane.b32.xlu0 %v2351_v28, %s2227_s2  ;;  %2099 = vrot.lane.b32.xlu2 %v2353_v29, %s2227_s2 }
 0x219   :  { %v208_v39 = vperm.slane %v200_v36, %v2345_v21  ;;  %v253_v40 = vrot.slane %v240_v27, 4  ;;  %v256_v41 = vsel %vm161_vm8, %v240_v27, %v255_v31 }
 0x21a   :  { %v185_v42 = vrot.slane %v180_v34, 4  ;;  %v188_v43 = vsel %vm161_vm8, %v180_v34, %v187_v30  ;;  %v198_v44 = vsel %vm161_vm8, %v197_v35, %v172_v6  ;;  %v241_v45 = vrot.slane %v236_v37, 4 }
 0x21b   :  { %v196_v46 = vperm.slane %v188_v43, %v2345_v21  ;;  %v204_v47 = vperm.slane %v198_v44, %v2345_v21  ;;  %v215_v48 = vrot.slane %v208_v39, 4  ;;  %v244_v49 = vsel %vm161_vm8, %v236_v37, %v243_v38 }
 0x21c   :  { %v186_v50 = vsel %vm161_vm8, %v185_v42, %v168_v15  ;;  %v254_v51 = vsel %vm161_vm8, %v253_v40, %v228_v13  ;;  %v264_v52 = vperm.slane %v256_v41, %v2345_v21  ;;  %v242_v53 = vsel %vm161_vm8, %v241_v45, %v224_v19 }
 0x21d   :  { %v211_v54 = vrot.slane %v196_v46, 4  ;;  %v213_v55 = vrot.slane %v204_v47, 4  ;;  %v216_v58 = vsel %vm161_vm8, 0.0, %v215_v48  ;;  %v260_v59 = vperm.slane %v254_v51, %v2345_v21 }
 0x21e   :  { %v271_v60 = vrot.slane %v264_v52, 4  ;;  %v289_v61 = vrot.slane %v216_v58, 4  ;;  %v248_v62 = vperm.slane %v242_v53, %v2345_v21  ;;  %v252_v0 = vperm.slane %v244_v49, %v2345_v21 }
 0x21f   :  { %v212_v1 = vsel %vm161_vm8, 0.0, %v211_v54  ;;  %v269_v2 = vrot.slane %v260_v59, 4  ;;  %v192_v3 = vperm.slane %v186_v50, %v2345_v21  ;;  %v214_v4 = vsel %vm161_vm8, 0.0, %v213_v55 }
 0x220   :  { %v272_v5 = vsel %vm161_vm8, 0.0, %v271_v60  ;;  %v278_v6 = vrot.slane %v212_v1, 4  ;;  %2109 = vrot.lane.b32.xlu0 %v2325_v56, %s2230_s30  ;;  %v265_v7 = vrot.slane %v248_v62, 4  ;;  %v267_v8 = vrot.slane %v252_v0, 4 }
 0x221   :  { %v343_v9 = vrot.slane %v272_v5, 4  ;;  %v270_v11 = vsel %vm161_vm8, 0.0, %v269_v2  ;;  %v338_v12 = vsel %vm161_vm8, %v271_v60, %v260_v59  ;;  %v209_v13 = vrot.slane %v192_v3, 4 }
 0x222   :  { %v266_v14 = vsel %vm161_vm8, 0.0, %v265_v7  ;;  %v268_v15 = vsel %vm161_vm8, 0.0, %v267_v8  ;;  %v327_v16 = vsel %vm161_vm8, %v267_v8, %v248_v62  ;;  %v342_v17 = vperm.slane %v338_v12, %v2335_v63 }
 0x223   :  { %v331_v18 = vperm.slane %v327_v16, %v2335_v63  ;;  %v332_v19 = vrot.slane %v268_v15, 4  ;;  %v344_v56 = vsel %vm161_vm8, %v343_v9, %v270_v11  ;;  %v210_v20 = vsel %vm161_vm8, 0.0, %v209_v13 }
 0x224   :  { %v348_v22 = vperm.slane %v344_v56, %v2335_v63  ;;  %v363_v23 = vrot.slane %v342_v17, 4  ;;  %v273_v24 = vsel %vm161_vm8, %v211_v54, %v192_v3  ;;  %v279_v25 = vsel %vm161_vm8, %v278_v6, %v210_v20 }
 0x225   :  { %v333_v26 = vsel %vm161_vm8, %v332_v19, %v266_v14  ;;  %v351_v27 = vrot.slane %v331_v18, 4  ;;  %v277_v30 = vperm.slane %v273_v24, %v2335_v63  ;;  %v283_v31 = vperm.slane %v279_v25, %v2335_v63 }
 0x226   :  { %v337_v32 = vperm.slane %v333_v26, %v2335_v63  ;;  %v361_v33 = vrot.slane %v348_v22, 4  ;;  %v284_v34 = vsel %vm161_vm8, %v215_v48, %v204_v47  ;;  %v290_v35 = vsel %vm161_vm8, %v289_v61, %v214_v4 }
 0x227   :  { %v288_v36 = vperm.slane %v284_v34, %v2335_v63  ;;  %v294_v37 = vperm.slane %v290_v35, %v2335_v63  ;;  %v295_v38 = vrot.slane %v283_v31, 4  ;;  %v297_v39 = vrot.slane %v277_v30, 4 }
 0x228   :  { %v349_v40 = vrot.slane %v337_v32, 4  ;;  %v362_v41 = vsel %vm161_vm8, %v361_v33, %v342_v17  ;;  %v352_v42 = vsel %vm161_vm8, %v337_v32, %v351_v27  ;;  %v364_v43 = vsel %vm161_vm8, %v348_v22, %v363_v23 }
 0x229   :  { %v368_v44 = vperm.slane %v362_v41, %v2345_v21  ;;  %v296_v45 = vsel %vm161_vm8, %v295_v38, %v277_v30  ;;  %v307_v46 = vrot.slane %v294_v37, 4  ;;  %v309_v47 = vrot.slane %v288_v36, 4 }
 0x22a   :  { %v350_v48 = vsel %vm161_vm8, %v349_v40, %v331_v18  ;;  %v302_v49 = vperm.slane %v296_v45, %v2345_v21  ;;  %v360_v50 = vperm.slane %v352_v42, %v2345_v21  ;;  %v372_v51 = vperm.slane %v364_v43, %v2345_v21 }
 0x22b   :  { %v356_v52 = vperm.slane %v350_v48, %v2345_v21  ;;  %v373_v53 = vrot.slane %v368_v44, 4  ;;  %v308_v54 = vsel %vm161_vm8, %v307_v46, %v288_v36  ;;  %v298_v55 = vsel %vm161_vm8, %v283_v31, %v297_v39 }
 0x22c   :  { %v314_v58 = vperm.slane %v308_v54, %v2345_v21  ;;  %v321_v59 = vrot.slane %v302_v49, 4  ;;  %v377_v60 = vrot.slane %v372_v51, 4  ;;  %v379_v61 = vrot.slane %v360_v50, 4 }
 0x22d   :  { %v2419_v62 = vsel %vm161_vm8, %v373_v53, %v356_v52  ;;  %v375_v0 = vrot.slane %v356_v52, 4  ;;  %v306_v1 = vperm.slane %v298_v55, %v2345_v21  ;;  %v310_v2 = vsel %vm161_vm8, %v294_v37, %v309_v47 }
 0x22e   :  { %v2424_v3 = vsel %vm161_vm8, %v314_v58, %v321_v59  ;;  %v319_v4 = vrot.slane %v314_v58, 4  ;;  %v2427_v5 = vsel %vm161_vm8, %v377_v60, %v360_v50  ;;  %v318_v7 = vperm.slane %v310_v2, %v2345_v21 }
 0x22f   :  { %v2430_v6 = vsel %vm161_vm8, %v368_v44, %v375_v0  ;;  %v325_v9 = vrot.slane %v306_v1, 4  ;;  %v2437_v11 = vsel %vm161_vm8, %v372_v51, %v379_v61 }
 0x230   :  { %v2434_v8 = vsel %vm161_vm8, %v319_v4, %v302_v49  ;;  %v323_v12 = vrot.slane %v318_v7, 4 }
 0x231   :  { %v2440_v13 = vsel %vm161_vm8, %v318_v7, %v325_v9 }
 0x232   :  { %v2443_v14 = vsel %vm161_vm8, %v323_v12, %v306_v1 }
 0x255   :  { %v2090_v15 = vpop.permute.xlu2 %2089 }
 0x256   :  { %v2091_v19 = vunpack.i.l.bf16 %v2090_v15  ;;  %v2092_v26 = vunpack.i.h.bf16 %v2090_v15 }
 0x258   :  { %v471_v23 = vrot.slane %v2091_v19, 4  ;;  %v483_v34 = vrot.slane %v2092_v26, 4 }
 0x25d   :  { %v2095_v16 = vpop.permute.xlu2 %2094 }
 0x25e   :  { %v2097_v56 = vunpack.i.h.bf16 %v2095_v16  ;;  %v2096_v20 = vunpack.i.l.bf16 %v2095_v16 }
 0x260   :  { %v469_v24 = vrot.slane %v2097_v56, 4  ;;  %v413_v25 = vrot.slane %v2096_v20, 4  ;;  %v472_v27 = vsel %vm161_vm8, %v2097_v56, %v471_v23 }
 0x261   :  { %v480_v35 = vperm.slane %v472_v27, %v2335_v63 }
 0x262   :  { %v470_v33 = vsel %vm161_vm8, %v469_v24, %v2091_v19 }
 0x263   :  { %v476_v42 = vperm.slane %v470_v33, %v2335_v63  ;;  %v507_v50 = vrot.slane %v480_v35, 4 }
 0x265   :  { %v495_v60 = vrot.slane %v476_v42, 4 }
 0x272   :  { %v2100_v17 = vpop.permute.xlu2 %2099 }
 0x273   :  { %v2101_v18 = vunpack.i.l.bf16 %v2100_v17  ;;  %v2102_v30 = vunpack.i.h.bf16 %v2100_v17 }
 0x275   :  { %v415_v22 = vrot.slane %v2101_v18, 4  ;;  %v414_v31 = vsel %vm161_vm8, %v413_v25, %v2101_v18  ;;  %v425_v38 = vrot.slane %v2102_v30, 4 }
 0x276   :  { %v420_v36 = vperm.slane %v414_v31, %v2335_v63 }
 0x277   :  { %v416_v32 = vsel %vm161_vm8, %v2096_v20, %v415_v22 }
 0x278   :  { %v424_v39 = vperm.slane %v416_v32, %v2335_v63  ;;  %v439_v47 = vrot.slane %v420_v36, 4 }
 0x27a   :  { %v451_v51 = vrot.slane %v424_v39, 4 }
 0x28a   :  { %v2105_v37 = vpop.permute.xlu0 %2104 }
 0x28b   :  { %v2107_v40 = vunpack.i.h.bf16 %v2105_v37  ;;  %v2106_v41 = vunpack.i.l.bf16 %v2105_v37 }
 0x28d   :  { %v427_v43 = vrot.slane %v2107_v40, 4  ;;  %v426_v44 = vsel %vm161_vm8, %v425_v38, %v2107_v40  ;;  %v481_v45 = vrot.slane %v2106_v41, 4  ;;  %v484_v46 = vsel %vm161_vm8, %v2106_v41, %v483_v34 }
 0x28e   :  { %v432_v48 = vperm.slane %v426_v44, %v2335_v63  ;;  %v492_v49 = vperm.slane %v484_v46, %v2335_v63 }
 0x28f   :  { %v428_v52 = vsel %vm161_vm8, %v2102_v30, %v427_v43  ;;  %v482_v53 = vsel %vm161_vm8, %v481_v45, %v2092_v26 }
 0x290   :  { %v436_v54 = vperm.slane %v428_v52, %v2335_v63  ;;  %v437_v55 = vrot.slane %v432_v48, 4  ;;  %v440_v58 = vsel %vm161_vm8, %v432_v48, %v439_v47  ;;  %v488_v59 = vperm.slane %v482_v53, %v2335_v63 }
 0x291   :  { %v448_v61 = vperm.slane %v440_v58, %v2345_v21  ;;  %v505_v0 = vrot.slane %v492_v49, 4  ;;  %v508_v1 = vsel %vm161_vm8, %v492_v49, %v507_v50 }
 0x292   :  { %v438_v2 = vsel %vm161_vm8, %v437_v55, %v420_v36  ;;  %v449_v4 = vrot.slane %v436_v54, 4  ;;  %v452_v7 = vsel %vm161_vm8, %v436_v54, %v451_v51  ;;  %v493_v9 = vrot.slane %v488_v59, 4 }
 0x293   :  { %v444_v12 = vperm.slane %v438_v2, %v2345_v21  ;;  %v460_v15 = vperm.slane %v452_v7, %v2345_v21  ;;  %v463_v16 = vrot.slane %v448_v61, 4  ;;  %v496_v17 = vsel %vm161_vm8, %v488_v59, %v495_v60 }
 0x294   :  { %v450_v18 = vsel %vm161_vm8, %v449_v4, %v424_v39  ;;  %v494_v19 = vsel %vm161_vm8, %v493_v9, %v476_v42  ;;  %v504_v56 = vperm.slane %v496_v17, %v2345_v21  ;;  %v506_v20 = vsel %vm161_vm8, %v505_v0, %v480_v35 }
 0x295   :  { %v456_v22 = vperm.slane %v450_v18, %v2345_v21  ;;  %v464_v23 = vsel %vm161_vm8, 0.0, %v463_v16  ;;  %v467_v24 = vrot.slane %v460_v15, 4  ;;  %v500_v25 = vperm.slane %v494_v19, %v2345_v21 }
 0x296   :  { %v512_v26 = vperm.slane %v506_v20, %v2345_v21  ;;  %v516_v27 = vperm.slane %v508_v1, %v2345_v21  ;;  %v519_v30 = vrot.slane %v504_v56, 4  ;;  %v461_v31 = vrot.slane %v444_v12, 4 }
 0x297   :  { %v465_v32 = vrot.slane %v456_v22, 4  ;;  %v468_v33 = vsel %vm161_vm8, 0.0, %v467_v24  ;;  %v517_v34 = vrot.slane %v500_v25, 4  ;;  %v530_v38 = vrot.slane %v464_v23, 4 }
 0x298   :  { %v520_v36 = vsel %vm161_vm8, 0.0, %v519_v30  ;;  %v521_v35 = vrot.slane %v512_v26, 4  ;;  %v523_v37 = vrot.slane %v516_v27, 4  ;;  %v541_v39 = vrot.slane %v468_v33, 4 }
 0x299   :  { %v584_v40 = vrot.slane %v520_v36, 4  ;;  %v518_v43 = vsel %vm161_vm8, 0.0, %v517_v34  ;;  %v579_v44 = vsel %vm161_vm8, %v519_v30, %v500_v25  ;;  %v462_v45 = vsel %vm161_vm8, 0.0, %v461_v31 }
 0x29a   :  { %v522_v41 = vsel %vm161_vm8, 0.0, %v521_v35  ;;  %v524_v42 = vsel %vm161_vm8, 0.0, %v523_v37  ;;  %v583_v47 = vperm.slane %v579_v44, %v2335_v63  ;;  %v590_v49 = vsel %vm161_vm8, %v523_v37, %v512_v26 }
 0x29b   :  { %v595_v46 = vrot.slane %v524_v42, 4  ;;  %v585_v48 = vsel %vm161_vm8, %v584_v40, %v518_v43  ;;  %v466_v50 = vsel %vm161_vm8, 0.0, %v465_v32  ;;  %v525_v51 = vsel %vm161_vm8, %v463_v16, %v444_v12 }
 0x29c   :  { %v589_v52 = vperm.slane %v585_v48, %v2335_v63  ;;  %v594_v53 = vperm.slane %v590_v49, %v2335_v63  ;;  %v529_v55 = vperm.slane %v525_v51, %v2335_v63  ;;  %v531_v59 = vsel %vm161_vm8, %v530_v38, %v462_v45 }
 0x29d   :  { %v596_v54 = vsel %vm161_vm8, %v595_v46, %v522_v41  ;;  %v536_v60 = vsel %vm161_vm8, %v467_v24, %v456_v22  ;;  %v542_v61 = vsel %vm161_vm8, %v541_v39, %v466_v50  ;;  %v535_v1 = vperm.slane %v531_v59, %v2335_v63 }
 0x29e   :  { %v600_v58 = vperm.slane %v596_v54, %v2335_v63  ;;  %v601_v0 = vrot.slane %v589_v52, 4  ;;  %v540_v2 = vperm.slane %v536_v60, %v2335_v63  ;;  %v546_v4 = vperm.slane %v542_v61, %v2335_v63 }
 0x29f   :  { %v603_v9 = vrot.slane %v583_v47, 4  ;;  %v615_v12 = vrot.slane %v594_v53, 4  ;;  %v549_v15 = vrot.slane %v529_v55, 4  ;;  %v547_v17 = vrot.slane %v535_v1, 4 }
 0x2a0   :  { %v613_v7 = vrot.slane %v600_v58, 4  ;;  %v602_v16 = vsel %vm161_vm8, %v601_v0, %v583_v47  ;;  %v559_v18 = vrot.slane %v546_v4, 4  ;;  %v561_v19 = vrot.slane %v540_v2, 4 }
 0x2a1   :  { %v608_v56 = vperm.slane %v602_v16, %v2345_v21  ;;  %v604_v22 = vsel %vm161_vm8, %v589_v52, %v603_v9  ;;  %v616_v23 = vsel %vm161_vm8, %v600_v58, %v615_v12  ;;  %v548_v25 = vsel %vm161_vm8, %v547_v17, %v529_v55 }
 0x2a2   :  { %v614_v20 = vsel %vm161_vm8, %v613_v7, %v594_v53  ;;  %v560_v26 = vsel %vm161_vm8, %v559_v18, %v540_v2  ;;  %v612_v27 = vperm.slane %v604_v22, %v2345_v21  ;;  %v554_v30 = vperm.slane %v548_v25, %v2345_v21 }
 0x2a3   :  { %v620_v24 = vperm.slane %v614_v20, %v2345_v21  ;;  %v566_v31 = vperm.slane %v560_v26, %v2345_v21  ;;  %v624_v32 = vperm.slane %v616_v23, %v2345_v21  ;;  %v550_v33 = vsel %vm161_vm8, %v535_v1, %v549_v15 }
 0x2a4   :  { %v631_v36 = vrot.slane %v612_v27, 4  ;;  %v558_v35 = vperm.slane %v550_v33, %v2345_v21  ;;  %v562_v37 = vsel %vm161_vm8, %v546_v4, %v561_v19  ;;  %v573_v38 = vrot.slane %v554_v30, 4 }
 0x2a5   :  { %v625_v34 = vrot.slane %v620_v24, 4  ;;  %v629_v39 = vrot.slane %v624_v32, 4  ;;  %v570_v40 = vperm.slane %v562_v37, %v2345_v21  ;;  %v571_v41 = vrot.slane %v566_v31, 4 }
 0x2a6   :  { %v577_v43 = vrot.slane %v558_v35, 4  ;;  %v627_v44 = vrot.slane %v608_v56, 4  ;;  %v632_v45 = vsel %vm161_vm8, %v624_v32, %v631_v36  ;;  %v574_v47 = vsel %vm161_vm8, %v566_v31, %v573_v38 }
 0x2a7   :  { %v626_v42 = vsel %vm161_vm8, %v625_v34, %v608_v56  ;;  %v630_v48 = vsel %vm161_vm8, %v629_v39, %v612_v27  ;;  %v572_v49 = vsel %vm161_vm8, %v571_v41, %v554_v30  ;;  %v635_v50 = vpack.c.bf16 %v574_v47, %v574_v47 }
 0x2a8   :  { %v634_v46 = vpack.c.bf16 %v626_v42, %v626_v42  ;;  %v638_v51 = vpack.c.bf16 %v630_v48, %v630_v48  ;;  %v578_v52 = vsel %vm161_vm8, %v570_v40, %v577_v43  ;;  %v633_v53 = vpack.c.bf16 %v572_v49, %v572_v49  ;;  %v2574_v43 = vpop.permute.xlu0 %2109 }
 0x2a9   :  { %v639_v55 = vpack.c.bf16 %v578_v52, %v578_v52  ;;  %v628_v58 = vsel %vm161_vm8, %v620_v24, %v627_v44  ;;  %v575_v59 = vrot.slane %v570_v40, 4  ;;  %v936_v60 = vsel %vm893_vm9, %v635_v50, 0 }
 0x2aa   :  { %v917_v54 = vsel %vm893_vm9, %v634_v46, 0  ;;  %v993_v61 = vsel %vm893_vm9, %v638_v51, 0  ;;  %v898_v0 = vsel %vm893_vm9, %v633_v53, 0  ;;  %v636_v1 = vpack.c.bf16 %v628_v58, %v628_v58  ;;  %945 = vmatpush.bf16.xpose.msra.mxu3 %v936_v60 }
 0x2ab   :  { %926 = vmatpush.bf16.xpose.msra.mxu2 %v917_v54  ;;  %v1012_v2 = vsel %vm893_vm9, %v639_v55, 0  ;;  %v576_v4 = vsel %vm161_vm8, %v575_v59, %v558_v35  ;;  %v640_v7 = vpack.c.bf16 %v632_v45, %v632_v45  ;;  %907 = vmatpush.bf16.xpose.msra.mxu1 %v898_v0  ;;  %v382_v17 = vpack.c.bf16 %v2419_v62, %v2419_v62 }
 0x2ac   :  { %v955_v9 = vsel %vm893_vm9, %v636_v1, 0  ;;  %v637_v12 = vpack.c.bf16 %v576_v4, %v576_v4  ;;  %v383_v18 = vpack.c.bf16 %v2424_v3, %v2424_v3  ;;  %v381_v19 = vpack.c.bf16 %v2434_v8, %v2434_v8 }
 0x2ad   :  { %964 = vmatpush.bf16.xpose.msrb.mxu0 %v955_v9  ;;  %v1031_v15 = vsel %vm893_vm9, %v640_v7, 0  ;;  %v384_v56 = vpack.c.bf16 %v2430_v6, %v2430_v6  ;;  %v386_v62 = vpack.c.bf16 %v2427_v5, %v2427_v5  ;;  %v387_v3 = vpack.c.bf16 %v2440_v13, %v2440_v13 }
 0x2ae   :  { %v974_v16 = vsel %vm893_vm9, %v637_v12, 0  ;;  %v385_v8 = vpack.c.bf16 %v2443_v14, %v2443_v14  ;;  %v388_v6 = vpack.c.bf16 %v2437_v11, %v2437_v11 }
 0x2b1   :  { %1985 = vmatmul.msk.bf16.vlgmr.msra.gmra.mxu3 %vm893_vm9, %v383_v18 }
 0x2b2   :  { %1021 = vmatpush.bf16.xpose.msrb.mxu3 %v1012_v2  ;;  %1984 = vmatmul.msk.bf16.vlgmr.msra.gmra.mxu2 %vm893_vm9, %v382_v17 }
 0x2b3   :  { %1002 = vmatpush.bf16.xpose.msrb.mxu2 %v993_v61  ;;  %983 = vmatpush.bf16.xpose.msrb.mxu1 %v974_v16 }
 0x2b4   :  { %1983 = vmatmul.msk.bf16.vlgmr.msra.gmra.mxu1 %vm893_vm9, %v381_v19  ;;  %1986 = vmatmul.msk.bf16.vlgmr.msrb.gmra.mxu0 %vm893_vm9, %v384_v56 }
 0x2b5   :  { %1040 = vmatpush.bf16.xpose.msra.mxu0 %v1031_v15 }
 0x2c1   :  { %1989 = vmatmul.msk.bf16.vlgmr.msrb.gmra.mxu3 %vm893_vm9, %v387_v3  ;;  %v2111_v3 = vunpack.i.l.bf16 %v2574_v43 }
 0x2c2   :  { %1988 = vmatmul.msk.bf16.vlgmr.msrb.gmra.mxu2 %vm893_vm9, %v386_v62 }
 0x2c4   :  { %1987 = vmatmul.msk.bf16.vlgmr.msrb.gmra.mxu1 %vm893_vm9, %v385_v8  ;;  %1990 = vmatmul.msk.bf16.vlgmr.msra.gmra.mxu0 %vm893_vm9, %v388_v6 }
 0x331   :  { %v909_v20 = vpop.f32.mrf.mxu1  ;;  %v966_v22 = vpop.f32.mrf.mxu0 }
 0x332   :  { %v1046_v5 = vsel %vm893_vm9, %v909_v20, -inf  ;;  %v1055_v13 = vsel %vm893_vm9, %v966_v22, -inf }
 0x333   :  { %1047 = vmax.xlane.f32.xlu0 %v1046_v5  ;;  %1056 = vmax.xlane.f32.xlu2 %v1055_v13  ;;  %v723_v13 = vrot.slane %v2111_v3, 4 }
 0x334   :  { %v947_v24 = vpop.f32.mrf.mxu3 }
 0x335   :  { %v928_v23 = vpop.f32.mrf.mxu2  ;;  %v1052_v14 = vsel %vm893_vm9, %v947_v24, -inf }
 0x336   :  { %1053 = vmax.xlane.f32.xlu1 %v1052_v14  ;;  %v1049_v11 = vsel %vm893_vm9, %v928_v23, -inf }
 0x339   :  { %v911_v25 = vpop.f32.mrf.mxu1  ;;  %v968_v26 = vpop.f32.mrf.mxu0 }
 0x33b   :  { %1050 = vmax.xlane.f32.xlu2 %v1049_v11 }
 0x33c   :  { %v949_v30 = vpop.f32.mrf.mxu3 }
 0x33d   :  { %v930_v27 = vpop.f32.mrf.mxu2 }
 0x341   :  { %v985_v31 = vpop.f32.mrf.mxu1  ;;  %v2561_v32 = vpop.f32.mrf.mxu0 }
 0x342   :  { %v1058_v33 = vsel %vm893_vm9, %v985_v31, -inf  ;;  %v1067_v34 = vsel %vm893_vm9, %v2561_v32, -inf }
 0x343   :  { %1068 = vmax.xlane.f32.xlu1 %v1067_v34  ;;  %1059 = vmax.xlane.f32.xlu2 %v1058_v33 }
 0x344   :  { %v1023_v35 = vpop.f32.mrf.mxu3 }
 0x345   :  { %v1004_v36 = vpop.f32.mrf.mxu2  ;;  %v1064_v37 = vsel %vm893_vm9, %v1023_v35, -inf }
 0x346   :  { %1065 = vmax.xlane.f32.xlu0 %v1064_v37  ;;  %v1061_v40 = vsel %vm893_vm9, %v1004_v36, -inf }
 0x349   :  { %v987_v38 = vpop.f32.mrf.mxu1  ;;  %v1044_v39 = vpop.f32.mrf.mxu0 }
 0x34b   :  { %1062 = vmax.xlane.f32.xlu1 %v1061_v40 }
 0x34c   :  { %v1025_v42 = vpop.f32.mrf.mxu3 }
 0x34d   :  { %v1006_v41 = vpop.f32.mrf.mxu2 }
 0x35a   :  { %2124 = vrot.lane.b32.xlu0 %v2351_v28, %s2230_s30 }
 0x35b   :  { %2114 = vrot.lane.b32.xlu2 %v2329_v57, %s2230_s30 }
 0x364   :  { %2119 = vrot.lane.b32.xlu1 %v2353_v29, %s2230_s30 }
 0x3a6   :  { %v1048_v44 = vpop.xlane.xlu0 %1047  ;;  %v1057_v46 = vpop.xlane.xlu2 %1056 }
 0x3a7   :  { %v1070_v45 = vsub.f32 %v909_v20, %v1048_v44  ;;  %v1073_v53 = vsub.f32 %v966_v22, %v1057_v46 }
 0x3a9   :  { %v1078_v47 = vmul.f32 1.442695, %v1070_v45  ;;  %v1054_v48 = vpop.xlane.xlu1 %1053  ;;  %v1084_v55 = vmul.f32 1.442695, %v1073_v53 }
 0x3aa   :  { %v1072_v49 = vsub.f32 %v947_v24, %v1054_v48  ;;  %v2112_v24 = vunpack.i.h.bf16 %v2574_v43 }
 0x3ab   :  { %2155 = vpow2.f32 %v1078_v47 }
 0x3ac   :  { %v1082_v50 = vmul.f32 1.442695, %v1072_v49 }
 0x3ae   :  { %v1051_v51 = vpop.xlane.xlu2 %1050  ;;  %2157 = vpow2.f32 %v1082_v50 }
 0x3af   :  { %v1071_v52 = vsub.f32 %v928_v23, %v1051_v51 }
 0x3b1   :  { %v2576_v28 = vpop.eup %2155  ;;  %v1080_v57 = vmul.f32 1.442695, %v1071_v52 }
 0x3b2   :  { %v1094_v29 = vsel %vm893_vm9, %v2576_v28, 0.0 }
 0x3b3   :  { %1095 = vadd.xlane.f32.xlu1 %v1094_v29  ;;  %2159 = vpow2.f32 %v1080_v57 }
 0x3b4   :  { %v2580_v54 = vpop.eup %2157  ;;  %2161 = vpow2.f32 %v1084_v55 }
 0x3b5   :  { %v1100_v60 = vsel %vm893_vm9, %v2580_v54, 0.0 }
 0x3b6   :  { %v1069_v58 = vpop.xlane.xlu1 %1068  ;;  %v1060_v59 = vpop.xlane.xlu2 %1059  ;;  %1101 = vadd.xlane.f32.xlu0 %v1100_v60 }
 0x3b7   :  { %v1074_v0 = vsub.f32 %v985_v31, %v1060_v59  ;;  %v1077_v18 = vsub.f32 %v2561_v32, %v1069_v58  ;;  %v735_v31 = vrot.slane %v2112_v24, 4 }
 0x3b9   :  { %v2584_v61 = vpop.eup %2159  ;;  %v1066_v1 = vpop.xlane.xlu0 %1065  ;;  %v1086_v7 = vmul.f32 1.442695, %v1074_v0  ;;  %v1092_v6 = vmul.f32 1.442695, %v1077_v18 }
 0x3ba   :  { %v1097_v2 = vsel %vm893_vm9, %v2584_v61, 0.0  ;;  %v1076_v4 = vsub.f32 %v1023_v35, %v1066_v1  ;;  %v2588_v15 = vpop.eup %2161 }
 0x3bb   :  { %1098 = vadd.xlane.f32.xlu2 %v1097_v2  ;;  %v1103_v56 = vsel %vm893_vm9, %v2588_v15, 0.0 }
 0x3bc   :  { %v1090_v9 = vmul.f32 1.442695, %v1076_v4 }
 0x3be   :  { %v1063_v12 = vpop.xlane.xlu1 %1062  ;;  %2163 = vpow2.f32 %v1090_v9  ;;  %v2590_v17 = vpop.permute.xlu2 %2114 }
 0x3bf   :  { %v1075_v16 = vsub.f32 %v1004_v36, %v1063_v12  ;;  %2165 = vpow2.f32 %v1086_v7  ;;  %v2117_v62 = vunpack.i.h.bf16 %v2590_v17  ;;  %v2116_v40 = vunpack.i.l.bf16 %v2590_v17 }
 0x3c1   :  { %v1088_v19 = vmul.f32 1.442695, %v1075_v16  ;;  %v721_v5 = vrot.slane %v2117_v62, 4  ;;  %v724_v14 = vsel %vm161_vm8, %v2117_v62, %v723_v13  ;;  %v665_v51 = vrot.slane %v2116_v40, 4 }
 0x3c2   :  { %v732_v27 = vperm.slane %v724_v14, %v2335_v63 }
 0x3c3   :  { %2167 = vpow2.f32 %v1088_v19  ;;  %1104 = vadd.xlane.f32.xlu2 %v1103_v56  ;;  %v722_v11 = vsel %vm161_vm8, %v721_v5, %v2111_v3 }
 0x3c4   :  { %v2597_v8 = vpop.eup %2163  ;;  %2169 = vpow2.f32 %v1092_v6  ;;  %v728_v32 = vperm.slane %v722_v11, %v2335_v63  ;;  %v759_v37 = vrot.slane %v732_v27, 4 }
 0x3c5   :  { %v1112_v20 = vsel %vm893_vm9, %v2597_v8, 0.0  ;;  %v2601_v22 = vpop.eup %2165 }
 0x3c6   :  { %1113 = vadd.xlane.f32.xlu1 %v1112_v20  ;;  %v1106_v25 = vsel %vm893_vm9, %v2601_v22, 0.0  ;;  %v747_v39 = vrot.slane %v728_v32, 4 }
 0x3c9   :  { %v2603_v23 = vpop.eup %2167 }
 0x3ca   :  { %v1109_v26 = vsel %vm893_vm9, %v2603_v23, 0.0  ;;  %v2614_v34 = vpop.eup %2169 }
 0x3cb   :  { %1107 = vadd.xlane.f32.xlu2 %v1106_v25  ;;  %1110 = vadd.xlane.f32.xlu0 %v1109_v26  ;;  %v1115_v42 = vsel %vm893_vm9, %v2614_v34, 0.0 }
 0x3cc   :  { %v2125_v30 = vpop.permute.xlu0 %2124 }
 0x3cd   :  { %v2126_v33 = vunpack.i.l.bf16 %v2125_v30  ;;  %v2127_v43 = vunpack.i.h.bf16 %v2125_v30 }
 0x3cf   :  { %v733_v36 = vrot.slane %v2126_v33, 4  ;;  %v736_v35 = vsel %vm161_vm8, %v2126_v33, %v735_v31  ;;  %v679_v55 = vrot.slane %v2127_v43, 4 }
 0x3d0   :  { %v744_v38 = vperm.slane %v736_v35, %v2335_v63 }
 0x3d1   :  { %v734_v41 = vsel %vm161_vm8, %v733_v36, %v2112_v24 }
 0x3d2   :  { %v740_v44 = vperm.slane %v734_v41, %v2335_v63  ;;  %v757_v45 = vrot.slane %v744_v38, 4  ;;  %v760_v46 = vsel %vm161_vm8, %v744_v38, %v759_v37 }
 0x3d3   :  { %1116 = vadd.xlane.f32.xlu0 %v1115_v42  ;;  %v768_v47 = vperm.slane %v760_v46, %v2345_v21 }
 0x3d4   :  { %v745_v48 = vrot.slane %v740_v44, 4  ;;  %v748_v49 = vsel %vm161_vm8, %v740_v44, %v747_v39  ;;  %v758_v50 = vsel %vm161_vm8, %v757_v45, %v732_v27 }
 0x3d5   :  { %v756_v52 = vperm.slane %v748_v49, %v2345_v21  ;;  %v764_v53 = vperm.slane %v758_v50, %v2345_v21  ;;  %v775_v57 = vrot.slane %v768_v47, 4 }
 0x3d6   :  { %v2120_v29 = vpop.permute.xlu1 %2119  ;;  %v746_v58 = vsel %vm161_vm8, %v745_v48, %v728_v32 }
 0x3d7   :  { %v2122_v59 = vunpack.i.h.bf16 %v2120_v29  ;;  %v2121_v60 = vunpack.i.l.bf16 %v2120_v29  ;;  %v752_v0 = vperm.slane %v746_v58, %v2345_v21  ;;  %v771_v1 = vrot.slane %v756_v52, 4 }
 0x3d8   :  { %v773_v2 = vrot.slane %v764_v53, 4  ;;  %v776_v4 = vsel %vm161_vm8, 0.0, %v775_v57  ;;  %v842_v7 = vsel %vm161_vm8, %v775_v57, %v764_v53 }
 0x3d9   :  { %v847_v9 = vrot.slane %v776_v4, 4  ;;  %v677_v12 = vrot.slane %v2122_v59, 4  ;;  %v680_v16 = vsel %vm161_vm8, %v2122_v59, %v679_v55  ;;  %v769_v17 = vrot.slane %v752_v0, 4 }
 0x3da   :  { %v772_v18 = vsel %vm161_vm8, 0.0, %v771_v1  ;;  %v774_v19 = vsel %vm161_vm8, 0.0, %v773_v2  ;;  %v688_v56 = vperm.slane %v680_v16, %v2335_v63  ;;  %v666_v20 = vsel %vm161_vm8, %v665_v51, %v2121_v60 }
 0x3db   :  { %v836_v62 = vrot.slane %v772_v18, 4  ;;  %v848_v3 = vsel %vm161_vm8, %v847_v9, %v774_v19  ;;  %v678_v6 = vsel %vm161_vm8, %v677_v12, %v2127_v43  ;;  %v770_v5 = vsel %vm161_vm8, 0.0, %v769_v17 }
 0x3dc   :  { %v684_v13 = vperm.slane %v678_v6, %v2335_v63  ;;  %v701_v24 = vrot.slane %v688_v56, 4  ;;  %v667_v14 = vrot.slane %v2121_v60, 4  ;;  %v672_v25 = vperm.slane %v666_v20, %v2335_v63 }
 0x3dd   :  { %v831_v26 = vsel %vm161_vm8, %v771_v1, %v752_v0  ;;  %v837_v11 = vsel %vm161_vm8, %v836_v62, %v770_v5  ;;  %v846_v27 = vperm.slane %v842_v7, %v2335_v63  ;;  %v852_v37 = vperm.slane %v848_v3, %v2335_v63 }
 0x3de   :  { %v689_v30 = vrot.slane %v684_v13, 4  ;;  %v668_v31 = vsel %vm161_vm8, %v2116_v40, %v667_v14  ;;  %v835_v32 = vperm.slane %v831_v26, %v2335_v63  ;;  %v841_v33 = vperm.slane %v837_v11, %v2335_v63 }
 0x3df   :  { %v676_v36 = vperm.slane %v668_v31, %v2335_v63  ;;  %v691_v35 = vrot.slane %v672_v25, 4  ;;  %v867_v42 = vrot.slane %v846_v27, 4  ;;  %v865_v49 = vrot.slane %v852_v37, 4 }
 0x3e0   :  { %v690_v38 = vsel %vm161_vm8, %v689_v30, %v672_v25  ;;  %v853_v39 = vrot.slane %v841_v33, 4  ;;  %v855_v41 = vrot.slane %v835_v32, 4 }
 0x3e1   :  { %v692_v43 = vsel %vm161_vm8, %v684_v13, %v691_v35  ;;  %v696_v44 = vperm.slane %v690_v38, %v2345_v21  ;;  %v702_v40 = vsel %vm161_vm8, %v701_v24, %v676_v36  ;;  %v703_v45 = vrot.slane %v676_v36, 4 }
 0x3e2   :  { %v700_v46 = vperm.slane %v692_v43, %v2345_v21  ;;  %v708_v47 = vperm.slane %v702_v40, %v2345_v21  ;;  %v854_v48 = vsel %vm161_vm8, %v853_v39, %v835_v32  ;;  %v856_v53 = vsel %vm161_vm8, %v841_v33, %v855_v41 }
 0x3e3   :  { %v704_v50 = vsel %vm161_vm8, %v688_v56, %v703_v45  ;;  %v713_v51 = vrot.slane %v696_v44, 4  ;;  %v860_v52 = vperm.slane %v854_v48, %v2345_v21  ;;  %v866_v58 = vsel %vm161_vm8, %v865_v49, %v846_v27 }
 0x3e4   :  { %v712_v57 = vperm.slane %v704_v50, %v2345_v21  ;;  %v715_v29 = vrot.slane %v700_v46, 4  ;;  %v717_v55 = vrot.slane %v708_v47, 4  ;;  %v872_v60 = vperm.slane %v866_v58, %v2345_v21 }
 0x3e5   :  { %v714_v59 = vsel %vm161_vm8, 0.0, %v713_v51  ;;  %v864_v0 = vperm.slane %v856_v53, %v2345_v21  ;;  %v868_v1 = vsel %vm161_vm8, %v852_v37, %v867_v42  ;;  %v879_v18 = vrot.slane %v860_v52, 4 }
 0x3e6   :  { %v716_v2 = vsel %vm161_vm8, 0.0, %v715_v29  ;;  %v718_v4 = vsel %vm161_vm8, 0.0, %v717_v55  ;;  %v719_v7 = vrot.slane %v712_v57, 4  ;;  %v777_v9 = vsel %vm161_vm8, %v715_v29, %v696_v44 }
 0x3e7   :  { %v782_v12 = vrot.slane %v716_v2, 4  ;;  %v877_v16 = vrot.slane %v872_v60, 4  ;;  %v876_v17 = vperm.slane %v868_v1, %v2345_v21  ;;  %v883_v56 = vrot.slane %v864_v0, 4 }
 0x3e8   :  { %v720_v19 = vsel %vm161_vm8, 0.0, %v719_v7  ;;  %v781_v62 = vperm.slane %v777_v9, %v2335_v63  ;;  %v788_v3 = vsel %vm161_vm8, %v719_v7, %v708_v47  ;;  %v880_v14 = vsel %vm161_vm8, %v872_v60, %v879_v18 }
 0x3e9   :  { %v783_v6 = vsel %vm161_vm8, %v782_v12, %v714_v59  ;;  %v793_v20 = vrot.slane %v720_v19, 4  ;;  %v878_v5 = vsel %vm161_vm8, %v877_v16, %v860_v52  ;;  %v881_v13 = vrot.slane %v876_v17, 4 }
 0x3ea   :  { %v886_v24 = vpack.c.bf16 %v878_v5, %v878_v5  ;;  %v884_v25 = vsel %vm161_vm8, %v876_v17, %v883_v56  ;;  %v787_v26 = vperm.slane %v783_v6, %v2335_v63  ;;  %v888_v27 = vpack.c.bf16 %v880_v14, %v880_v14 }
 0x3eb   :  { %v882_v11 = vsel %vm161_vm8, %v881_v13, %v864_v0  ;;  %v892_v30 = vpack.c.bf16 %v884_v25, %v884_v25  ;;  %v792_v31 = vperm.slane %v788_v3, %v2335_v63  ;;  %v794_v36 = vsel %vm161_vm8, %v793_v20, %v718_v4 }
 0x3ec   :  { %v1270_v32 = vsel %vm1249_vm10, %v886_v24, 0  ;;  %v890_v33 = vpack.c.bf16 %v882_v11, %v882_v11  ;;  %v799_v35 = vrot.slane %v787_v26, 4  ;;  %v1308_v37 = vsel %vm1249_vm10, %v888_v27, 0 }
 0x3ed   :  { %1279 = vmatpush.bf16.msra.mxu2 %v1270_v32  ;;  %v798_v38 = vperm.slane %v794_v36, %v2335_v63  ;;  %v801_v39 = vrot.slane %v781_v62, 4  ;;  %1317 = vmatpush.bf16.msrb.mxu0 %v1308_v37  ;;  %v1384_v42 = vsel %vm1249_vm10, %v892_v30, 0  ;;  %v813_v44 = vrot.slane %v792_v31, 4 }
 0x3ee   :  { %v1346_v41 = vsel %vm1249_vm10, %v890_v33, 0  ;;  %v800_v43 = vsel %vm161_vm8, %v799_v35, %v781_v62 }
 0x3ef   :  { %v806_v40 = vperm.slane %v800_v43, %v2345_v21  ;;  %v811_v45 = vrot.slane %v798_v38, 4  ;;  %v802_v46 = vsel %vm161_vm8, %v787_v26, %v801_v39  ;;  %v814_v48 = vsel %vm161_vm8, %v798_v38, %v813_v44 }
 0x3f0   :  { %v810_v47 = vperm.slane %v802_v46, %v2345_v21  ;;  %v822_v51 = vperm.slane %v814_v48, %v2345_v21 }
 0x3f1   :  { %1355 = vmatpush.bf16.msrb.mxu2 %v1346_v41  ;;  %1393 = vmatpush.bf16.msra.mxu0 %v1384_v42  ;;  %v812_v49 = vsel %vm161_vm8, %v811_v45, %v792_v31  ;;  %v825_v50 = vrot.slane %v806_v40, 4 }
 0x3f2   :  { %v818_v52 = vperm.slane %v812_v49, %v2345_v21  ;;  %v829_v53 = vrot.slane %v810_v47, 4  ;;  %v827_v57 = vrot.slane %v822_v51, 4 }
 0x3f4   :  { %v826_v29 = vsel %vm161_vm8, %v818_v52, %v825_v50  ;;  %v830_v55 = vsel %vm161_vm8, %v822_v51, %v829_v53  ;;  %v823_v58 = vrot.slane %v818_v52, 4  ;;  %v828_v0 = vsel %vm161_vm8, %v827_v57, %v810_v47 }
 0x3f5   :  { %v887_v59 = vpack.c.bf16 %v826_v29, %v826_v29  ;;  %v891_v60 = vpack.c.bf16 %v830_v55, %v830_v55  ;;  %v889_v2 = vpack.c.bf16 %v828_v0, %v828_v0 }
 0x3f6   :  { %v824_v1 = vsel %vm161_vm8, %v823_v58, %v806_v40 }
 0x3f7   :  { %v1289_v4 = vsel %vm1249_vm10, %v887_v59, 0  ;;  %v885_v7 = vpack.c.bf16 %v824_v1, %v824_v1  ;;  %v1365_v9 = vsel %vm1249_vm10, %v891_v60, 0  ;;  %v1327_v16 = vsel %vm1249_vm10, %v889_v2, 0 }
 0x3f8   :  { %1298 = vmatpush.bf16.msra.mxu3 %v1289_v4 }
 0x3f9   :  { %v1251_v12 = vsel %vm1249_vm10, %v885_v7, 0 }
 0x3fa   :  { %1260 = vmatpush.bf16.msra.mxu1 %v1251_v12 }
 0x3fc   :  { %1374 = vmatpush.bf16.msrb.mxu3 %v1365_v9 }
 0x3fe   :  { %1336 = vmatpush.bf16.msrb.mxu1 %v1327_v16 }
 0x426   :  { %v1096_v17 = vpop.xlane.xlu1 %1095 }
 0x427   :  { %2171 = vrcp.f32 %v1096_v17  ;;  %v1129_v6 = vand.u32 2147483648, %v1096_v17  ;;  %v1127_v13 = vand.u32 2147483647, %v1096_v17  ;;  %vm1123_vm12 = vweird.f32 %v1096_v17 }
 0x429   :  { %v1102_v18 = vpop.xlane.xlu0 %1101  ;;  %v1130_v25 = vor.u32 1.1754944e-38, %v1129_v6  ;;  %vm1128_vm14 = vcmp.eq.f32.partialorder %v1127_v13, 8.507059e+37 }
 0x42a   :  { %2173 = vrcp.f32 %v1102_v18  ;;  %v1157_v30 = vand.u32 2147483648, %v1102_v18  ;;  %v1155_v37 = vand.u32 2147483647, %v1102_v18  ;;  %vm1151_vm1 = vweird.f32 %v1102_v18 }
 0x42c   :  { %v1158_v41 = vor.u32 1.1754944e-38, %v1157_v30  ;;  %vm1156_vm4 = vcmp.eq.f32.partialorder %v1155_v37, 8.507059e+37 }
 0x42d   :  { %v2172_v19 = vpop.eup %2171 }
 0x42e   :  { %v1119_v56 = vmul.f32 %v2172_v19, %v1096_v17  ;;  %v1099_v62 = vpop.xlane.xlu2 %1098  ;;  %vm1124_vm11 = vweird.f32 %v2172_v19 }
 0x42f   :  { %2175 = vrcp.f32 %v1099_v62  ;;  %vm1125_vm13 = vmor %vm1123_vm12, %vm1124_vm11  ;;  %v1143_v42 = vand.u32 2147483648, %v1099_v62  ;;  %v1141_v45 = vand.u32 2147483647, %v1099_v62  ;;  %vm1137_vm5 = vweird.f32 %v1099_v62 }
 0x430   :  { %v1120_v3 = vsub.f32 1.0, %v1119_v56  ;;  %v2174_v20 = vpop.eup %2173 }
 0x431   :  { %v1147_v24 = vmul.f32 %v2174_v20, %v1102_v18  ;;  %vm1152_vm15 = vweird.f32 %v2174_v20  ;;  %v1144_v49 = vor.u32 1.1754944e-38, %v1143_v42  ;;  %vm1142_vm7 = vcmp.eq.f32.partialorder %v1141_v45, 8.507059e+37 }
 0x432   :  { %v1121_v5 = vmul.f32 %v2172_v19, %v1120_v3  ;;  %vm1153_vm2 = vmor %vm1151_vm1, %vm1152_vm15 }
 0x433   :  { %v1148_v26 = vsub.f32 1.0, %v1147_v24 }
 0x434   :  { %v1122_v14 = vadd.f32 %v2172_v19, %v1121_v5 }
 0x435   :  { %v2176_v11 = vpop.eup %2175  ;;  %v1149_v32 = vmul.f32 %v2174_v20, %v1148_v26 }
 0x436   :  { %v1126_v27 = vsel %vm1125_vm13, %v2172_v19, %v1122_v14  ;;  %v1133_v33 = vmul.f32 %v2176_v11, %v1099_v62  ;;  %v1105_v36 = vpop.xlane.xlu2 %1104  ;;  %vm1138_vm3 = vweird.f32 %v2176_v11 }
 0x437   :  { %v1131_v31 = vsel %vm1128_vm14, %v1130_v25, %v1126_v27  ;;  %2177 = vrcp.f32 %v1105_v36  ;;  %v1150_v38 = vadd.f32 %v2174_v20, %v1149_v32  ;;  %vm1139_vm6 = vmor %vm1137_vm5, %vm1138_vm3  ;;  %v1169_v60 = vand.u32 2147483647, %v1105_v36 }
 0x438   :  { %v1230_v35 = vmul.f32 %v2576_v28, %v1131_v31  ;;  %v1134_v39 = vsub.f32 1.0, %v1133_v33  ;;  %v1171_v0 = vand.u32 2147483648, %v1105_v36  ;;  %vm1165_vm11 = vweird.f32 %v1105_v36 }
 0x439   :  { %v1154_v44 = vsel %vm1153_vm2, %v2174_v20, %v1150_v38  ;;  %v1114_v46 = vpop.xlane.xlu1 %1113  ;;  %vm1170_vm13 = vcmp.eq.f32.partialorder %v1169_v60, 8.507059e+37 }
 0x43a   :  { %v1238_v43 = vpack.c.bf16 %v1230_v35, %v1230_v35  ;;  %v1135_v40 = vmul.f32 %v2176_v11, %v1134_v39  ;;  %2179 = vrcp.f32 %v1114_v46  ;;  %v1159_v47 = vsel %vm1156_vm4, %v1158_v41, %v1154_v44 }
 0x43b   :  { %v1232_v57 = vmul.f32 %v2580_v54, %v1159_v47  ;;  %v1211_v4 = vand.u32 2147483647, %v1114_v46  ;;  %v1213_v16 = vand.u32 2147483648, %v1114_v46  ;;  %vm1207_vm14 = vweird.f32 %v1114_v46 }
 0x43c   :  { %1991 = vmatmul.msk.bf16.vlgmr.msra.gmra.mxu1 %vm893_vm9, %v1238_v43  ;;  %v1136_v28 = vadd.f32 %v2176_v11, %v1135_v40 }
 0x43d   :  { %v2178_v48 = vpop.eup %2177  ;;  %v1240_v7 = vpack.c.bf16 %v1232_v57, %v1232_v57  ;;  %vm2716_vm1 = vcmp.eq.f32.partialorder %v1211_v4, 8.507059e+37  ;;  %v1214_v14 = vor.u32 1.1754944e-38, %v1213_v16 }
 0x43e   :  { %v1140_v50 = vsel %vm1139_vm6, %v2176_v11, %v1136_v28  ;;  %v1161_v51 = vmul.f32 %v2178_v48, %v1105_v36  ;;  %v2705_v52 = vpop.xlane.xlu2 %1107  ;;  %v2707_v53 = vpop.xlane.xlu0 %1110  ;;  %vm1166_vm10 = vweird.f32 %v2178_v48 }
 0x43f   :  { %v1145_v29 = vsel %vm1142_vm7, %v1144_v49, %v1140_v50  ;;  %2181 = vrcp.f32 %v2705_v52  ;;  %vm1167_vm12 = vmor %vm1165_vm11, %vm1166_vm10  ;;  %1993 = vmatmul.msk.bf16.vlgmr.msra.gmra.mxu3 %vm893_vm9, %v1240_v7  ;;  %v1183_v26 = vand.u32 2147483647, %v2705_v52  ;;  %v1185_v11 = vand.u32 2147483648, %v2705_v52 }
 0x440   :  { %v1231_v55 = vmul.f32 %v2584_v61, %v1145_v29  ;;  %v1162_v58 = vsub.f32 1.0, %v1161_v51  ;;  %2183 = vrcp.f32 %v2707_v53  ;;  %v2180_v59 = vpop.eup %2179  ;;  %v1172_v61 = vor.u32 1.1754944e-38, %v1171_v0 }
 0x441   :  { %v1203_v2 = vmul.f32 %v2180_v59, %v1114_v46  ;;  %vm1208_vm15 = vweird.f32 %v2180_v59  ;;  %v1199_v30 = vand.u32 2147483648, %v2707_v53  ;;  %v1197_v35 = vand.u32 2147483647, %v2707_v53 }
 0x442   :  { %v1163_v1 = vmul.f32 %v2178_v48, %v1162_v58  ;;  %v1239_v9 = vpack.c.bf16 %v1231_v55, %v1231_v55  ;;  %vm1209_vm2 = vmor %vm1207_vm14, %vm1208_vm15  ;;  %vm1179_vm5 = vweird.f32 %v2705_v52  ;;  %v1186_v41 = vor.u32 1.1754944e-38, %v1185_v11 }
 0x443   :  { %v1204_v54 = vsub.f32 1.0, %v1203_v2  ;;  %vm1193_vm7 = vweird.f32 %v2707_v53  ;;  %vm1184_vm10 = vcmp.eq.f32.partialorder %v1183_v26, 8.507059e+37  ;;  %v1200_v44 = vor.u32 1.1754944e-38, %v1199_v30 }
 0x444   :  { %v1164_v12 = vadd.f32 %v2178_v48, %v1163_v1  ;;  %1992 = vmatmul.msk.bf16.vlgmr.msra.gmra.mxu2 %vm893_vm9, %v1239_v9 }
 0x445   :  { %v2182_v17 = vpop.eup %2181  ;;  %v1205_v56 = vmul.f32 %v2180_v59, %v1204_v54 }
 0x446   :  { %v2184_v18 = vpop.eup %2183  ;;  %v1168_v19 = vsel %vm1167_vm12, %v2178_v48, %v1164_v12  ;;  %v1175_v62 = vmul.f32 %v2182_v17, %v2705_v52  ;;  %v1117_v3 = vpop.xlane.xlu0 %1116  ;;  %vm1180_vm3 = vweird.f32 %v2182_v17  ;;  %vm1198_vm12 = vcmp.eq.f32.partialorder %v1197_v35, 8.507059e+37 }
 0x447   :  { %v1173_v6 = vsel %vm1170_vm13, %v1172_v61, %v1168_v19  ;;  %v1189_v5 = vmul.f32 %v2184_v18, %v2707_v53  ;;  %2185 = vrcp.f32 %v1117_v3  ;;  %v1206_v24 = vadd.f32 %v2180_v59, %v1205_v56  ;;  %vm1181_vm6 = vmor %vm1179_vm5, %vm1180_vm3 }
 0x448   :  { %v1233_v13 = vmul.f32 %v2588_v15, %v1173_v6  ;;  %v1176_v25 = vsub.f32 1.0, %v1175_v62  ;;  %vm1194_vm4 = vweird.f32 %v2184_v18  ;;  %v1225_v52 = vand.u32 2147483647, %v1117_v3 }
 0x449   :  { %v1190_v27 = vsub.f32 1.0, %v1189_v5  ;;  %v1210_v31 = vsel %vm1209_vm2, %v2180_v59, %v1206_v24  ;;  %vm1195_vm11 = vmor %vm1193_vm7, %vm1194_vm4  ;;  %vm1221_vm14 = vweird.f32 %v1117_v3  ;;  %vm1645_vm2 = vcmask 130048  }
 0x44a   :  { %v1177_v32 = vmul.f32 %v2182_v17, %v1176_v25  ;;  %v1241_v33 = vpack.c.bf16 %v1233_v13, %v1233_v13  ;;  %v1215_v36 = vsel %vm2716_vm1, %v1214_v14, %v1210_v31  ;;  %vm1226_vm1 = vcmp.eq.f32.partialorder %v1225_v52, 8.507059e+37 }
 0x44b   :  { %v1191_v15 = vmul.f32 %v2184_v18, %v1190_v27  ;;  %v1236_v39 = vmul.f32 %v2597_v8, %v1215_v36  ;;  %v1227_v8 = vand.u32 2147483648, %v1117_v3 }
 0x44c   :  { %v1178_v37 = vadd.f32 %v2182_v17, %v1177_v32  ;;  %1994 = vmatmul.msk.bf16.vlgmr.msrb.gmra.mxu0 %vm893_vm9, %v1241_v33 }
 0x44d   :  { %v2186_v38 = vpop.eup %2185  ;;  %v1192_v42 = vadd.f32 %v2184_v18, %v1191_v15  ;;  %v1244_v50 = vpack.c.bf16 %v1236_v39, %v1236_v39  ;;  %v1228_v55 = vor.u32 1.1754944e-38, %v1227_v8 }
 0x44e   :  { %v1182_v43 = vsel %vm1181_vm6, %v2182_v17, %v1178_v37  ;;  %v1217_v40 = vmul.f32 %v2186_v38, %v1117_v3  ;;  %vm1222_vm13 = vweird.f32 %v2186_v38 }
 0x44f   :  { %v1187_v45 = vsel %vm1184_vm10, %v1186_v41, %v1182_v43  ;;  %v1196_v46 = vsel %vm1195_vm11, %v2184_v18, %v1192_v42  ;;  %vm1223_vm15 = vmor %vm1221_vm14, %vm1222_vm13  ;;  %1997 = vmatmul.msk.bf16.vlgmr.msrb.gmra.mxu3 %vm893_vm9, %v1244_v50 }
 0x450   :  { %v1234_v47 = vmul.f32 %v2601_v22, %v1187_v45  ;;  %v1201_v28 = vsel %vm1198_vm12, %v1200_v44, %v1196_v46  ;;  %v1218_v48 = vsub.f32 1.0, %v1217_v40 }
 0x451   :  { %v1235_v49 = vmul.f32 %v2603_v23, %v1201_v28 }
 0x452   :  { %v1219_v51 = vmul.f32 %v2186_v38, %v1218_v48  ;;  %v1242_v53 = vpack.c.bf16 %v1234_v47, %v1234_v47 }
 0x453   :  { %v1243_v57 = vpack.c.bf16 %v1235_v49, %v1235_v49 }
 0x454   :  { %v1220_v29 = vadd.f32 %v2186_v38, %v1219_v51  ;;  %1995 = vmatmul.msk.bf16.vlgmr.msrb.gmra.mxu1 %vm893_vm9, %v1242_v53 }
 0x455   :  { %1996 = vmatmul.msk.bf16.vlgmr.msrb.gmra.mxu2 %vm893_vm9, %v1243_v57 }
 0x456   :  { %v1224_v22 = vsel %vm1223_vm15, %v2186_v38, %v1220_v29 }
 0x457   :  { %v1229_v23 = vsel %vm1226_vm1, %v1228_v55, %v1224_v22 }
 0x458   :  { %v1237_v58 = vmul.f32 %v2614_v34, %v1229_v23 }
 0x45a   :  { %v1245_v59 = vpack.c.bf16 %v1237_v58, %v1237_v58 }
 0x45c   :  { %1998 = vmatmul.msk.bf16.vlgmr.msra.gmra.mxu0 %vm893_vm9, %v1245_v59 }
 0x4b9   :  { %v1262_v60 = vpop.f32.mrf.mxu1 }
 0x4ba   :  { %v1401_v7 = vrot.slane %v1262_v60, 4 }
 0x4c1   :  { %v1264_v0 = vpop.f32.mrf.mxu1 }
 0x4c2   :  { %v1300_v1 = vpop.f32.mrf.mxu3 }
 0x4c3   :  { %v1413_v56 = vrot.slane %v1300_v1, 4 }
 0x4c7   :  { %v1281_v2 = vpop.f32.mrf.mxu2 }
 0x4c8   :  { %v1457_v62 = vrot.slane %v1281_v2, 4 }
 0x4c9   :  { %v1319_v4 = vpop.f32.mrf.mxu0 }
 0x4ca   :  { %v1302_v9 = vpop.f32.mrf.mxu3  ;;  %v1469_v3 = vrot.slane %v1319_v4, 4 }
 0x4cf   :  { %v1283_v12 = vpop.f32.mrf.mxu2 }
 0x4d1   :  { %v1321_v54 = vpop.f32.mrf.mxu0  ;;  %v1338_v16 = vpop.f32.mrf.mxu1 }
 0x4d2   :  { %v1399_v17 = vrot.slane %v1338_v16, 4  ;;  %v1402_v61 = vsel %vm161_vm8, %v1338_v16, %v1401_v7  ;;  %v1376_v5 = vpop.f32.mrf.mxu3 }
 0x4d3   :  { %v1410_v34 = vperm.slane %v1402_v61, %v2335_v63  ;;  %v1411_v24 = vrot.slane %v1376_v5, 4  ;;  %v1414_v14 = vsel %vm161_vm8, %v1376_v5, %v1413_v56 }
 0x4d4   :  { %v1400_v18 = vsel %vm161_vm8, %v1399_v17, %v1262_v60  ;;  %v1422_v30 = vperm.slane %v1414_v14, %v2335_v63 }
 0x4d5   :  { %v1406_v19 = vperm.slane %v1400_v18, %v2335_v63  ;;  %v1437_v20 = vrot.slane %v1410_v34, 4  ;;  %v1412_v36 = vsel %vm161_vm8, %v1411_v24, %v1300_v1 }
 0x4d6   :  { %v1418_v37 = vperm.slane %v1412_v36, %v2335_v63  ;;  %v1435_v38 = vrot.slane %v1422_v30, 4 }
 0x4d7   :  { %v1425_v6 = vrot.slane %v1406_v19, 4  ;;  %v1438_v39 = vsel %vm161_vm8, %v1422_v30, %v1437_v20 }
 0x4d8   :  { %v1357_v13 = vpop.f32.mrf.mxu2  ;;  %v1446_v42 = vperm.slane %v1438_v39, %v2345_v21  ;;  %v1423_v45 = vrot.slane %v1418_v37, 4  ;;  %v1436_v47 = vsel %vm161_vm8, %v1435_v38, %v1410_v34 }
 0x4d9   :  { %v1455_v25 = vrot.slane %v1357_v13, 4  ;;  %v1458_v26 = vsel %vm161_vm8, %v1357_v13, %v1457_v62  ;;  %v1340_v11 = vpop.f32.mrf.mxu1  ;;  %v1395_v27 = vpop.f32.mrf.mxu0  ;;  %v1426_v46 = vsel %vm161_vm8, %v1418_v37, %v1425_v6  ;;  %v1442_v49 = vperm.slane %v1436_v47, %v2345_v21 }
 0x4da   :  { %v1466_v31 = vperm.slane %v1458_v26, %v2335_v63  ;;  %v1467_v32 = vrot.slane %v1395_v27, 4  ;;  %v1470_v33 = vsel %vm161_vm8, %v1395_v27, %v1469_v3  ;;  %v1434_v48 = vperm.slane %v1426_v46, %v2345_v21  ;;  %v1378_v57 = vpop.f32.mrf.mxu3 }
 0x4db   :  { %v1456_v15 = vsel %vm161_vm8, %v1455_v25, %v1281_v2  ;;  %v1478_v35 = vperm.slane %v1470_v33, %v2335_v63  ;;  %v1453_v8 = vrot.slane %v1446_v42, 4  ;;  %v1424_v51 = vsel %vm161_vm8, %v1423_v45, %v1406_v19 }
 0x4dc   :  { %v1462_v41 = vperm.slane %v1456_v15, %v2335_v63  ;;  %v1493_v43 = vrot.slane %v1466_v31, 4  ;;  %v1468_v44 = vsel %vm161_vm8, %v1467_v32, %v1319_v4  ;;  %v1430_v55 = vperm.slane %v1424_v51, %v2345_v21 }
 0x4dd   :  { %v1491_v40 = vrot.slane %v1478_v35, 4  ;;  %v1474_v50 = vperm.slane %v1468_v44, %v2335_v63  ;;  %v1449_v22 = vrot.slane %v1434_v48, 4  ;;  %v1451_v23 = vrot.slane %v1442_v49, 4 }
 0x4de   :  { %v1481_v28 = vrot.slane %v1462_v41, 4  ;;  %v1494_v53 = vsel %vm161_vm8, %v1478_v35, %v1493_v43  ;;  %v1454_v58 = vsel %vm161_vm8, 0.0, %v1453_v8  ;;  %v1522_v60 = vsel %vm161_vm8, %v1453_v8, %v1442_v49 }
 0x4df   :  { %v1492_v52 = vsel %vm161_vm8, %v1491_v40, %v1466_v31  ;;  %v1527_v0 = vrot.slane %v1454_v58, 4  ;;  %v1479_v1 = vrot.slane %v1474_v50, 4  ;;  %v1447_v4 = vrot.slane %v1430_v55, 4 }
 0x4e0   :  { %v1359_v29 = vpop.f32.mrf.mxu2  ;;  %v1482_v2 = vsel %vm161_vm8, %v1474_v50, %v1481_v28  ;;  %v1450_v7 = vsel %vm161_vm8, 0.0, %v1449_v22  ;;  %v1452_v9 = vsel %vm161_vm8, 0.0, %v1451_v23  ;;  %v1511_v12 = vsel %vm161_vm8, %v1449_v22, %v1430_v55 }
 0x4e1   :  { %v1397_v59 = vpop.f32.mrf.mxu0  ;;  %v1516_v54 = vrot.slane %v1450_v7, 4  ;;  %v1526_v16 = vperm.slane %v1522_v60, %v2335_v63  ;;  %v1528_v17 = vsel %vm161_vm8, %v1527_v0, %v1452_v9  ;;  %v1480_v61 = vsel %vm161_vm8, %v1479_v1, %v1462_v41 }
 0x4e2   :  { %v1532_v18 = vperm.slane %v1528_v17, %v2335_v63  ;;  %v1486_v34 = vperm.slane %v1480_v61, %v2345_v21  ;;  %v1490_v19 = vperm.slane %v1482_v2, %v2345_v21  ;;  %v1498_v56 = vperm.slane %v1492_v52, %v2345_v21 }
 0x4e3   :  { %v1547_v62 = vrot.slane %v1526_v16, 4  ;;  %v1502_v3 = vperm.slane %v1494_v53, %v2345_v21  ;;  %v1448_v6 = vsel %vm161_vm8, 0.0, %v1447_v4  ;;  %v1515_v20 = vperm.slane %v1511_v12, %v2335_v63 }
 0x4e4   :  { %v1503_v5 = vrot.slane %v1486_v34, 4  ;;  %v1505_v13 = vrot.slane %v1490_v19, 4  ;;  %v1507_v24 = vrot.slane %v1498_v56, 4  ;;  %v1517_v14 = vsel %vm161_vm8, %v1516_v54, %v1448_v6 }
 0x4e5   :  { %v1509_v25 = vrot.slane %v1502_v3, 4  ;;  %v1521_v26 = vperm.slane %v1517_v14, %v2335_v63  ;;  %v1535_v11 = vrot.slane %v1515_v20, 4  ;;  %v1548_v27 = vsel %vm161_vm8, %v1532_v18, %v1547_v62 }
 0x4e6   :  { %v1506_v30 = vsel %vm161_vm8, 0.0, %v1505_v13  ;;  %v1508_v31 = vsel %vm161_vm8, 0.0, %v1507_v24  ;;  %v1565_v32 = vsel %vm161_vm8, %v1505_v13, %v1486_v34  ;;  %v1504_v33 = vsel %vm161_vm8, 0.0, %v1503_v5  ;;  %v2053_v5 = vld [vmem:[%s2925_s4] sm:$0xff] }
 0x4e7   :  { %v1510_v36 = vsel %vm161_vm8, 0.0, %v1509_v25  ;;  %v1570_v15 = vrot.slane %v1506_v30, 4  ;;  %v1576_v35 = vsel %vm161_vm8, %v1509_v25, %v1498_v56  ;;  %v1536_v37 = vsel %vm161_vm8, %v1521_v26, %v1535_v11 }
 0x4e8   :  { %v1580_v38 = vperm.slane %v1576_v35, %v2335_v63  ;;  %v1581_v39 = vrot.slane %v1510_v36, 4  ;;  %v1556_v41 = vperm.slane %v1548_v27, %v2345_v21  ;;  %v1569_v42 = vperm.slane %v1565_v32, %v2335_v63 }
 0x4e9   :  { %v1571_v43 = vsel %vm161_vm8, %v1570_v15, %v1504_v33  ;;  %v1533_v44 = vrot.slane %v1521_v26, 4  ;;  %v1545_v40 = vrot.slane %v1532_v18, 4  ;;  %v1544_v47 = vperm.slane %v1536_v37, %v2345_v21 }
 0x4ea   :  { %v1582_v45 = vsel %vm161_vm8, %v1581_v39, %v1508_v31  ;;  %v1601_v46 = vrot.slane %v1580_v38, 4  ;;  %v1575_v28 = vperm.slane %v1571_v43, %v2335_v63  ;;  %v1589_v49 = vrot.slane %v1569_v42, 4 }
 0x4eb   :  { %v1586_v48 = vperm.slane %v1582_v45, %v2335_v63  ;;  %v1534_v8 = vsel %vm161_vm8, %v1533_v44, %v1515_v20  ;;  %v1546_v51 = vsel %vm161_vm8, %v1545_v40, %v1526_v16  ;;  %v1561_v53 = vrot.slane %v1556_v41, 4  ;;  %v2196_v40 = vld [vmem:[%s2921_s0 + $0x8] sm:$0xff] }
 0x4ec   :  { %v1540_v50 = vperm.slane %v1534_v8, %v2345_v21  ;;  %v1587_v52 = vrot.slane %v1575_v28, 4  ;;  %v1590_v57 = vsel %vm161_vm8, %v1575_v28, %v1589_v49  ;;  %v1552_v55 = vperm.slane %v1546_v51, %v2345_v21 }
 0x4ed   :  { %v1602_v29 = vsel %vm161_vm8, %v1586_v48, %v1601_v46  ;;  %v1598_v22 = vperm.slane %v1590_v57, %v2345_v21  ;;  %v1563_v63 = vrot.slane %v1544_v47, 4  ;;  %v1599_v0 = vrot.slane %v1586_v48, 4 }
 0x4ee   :  { %v1610_v23 = vperm.slane %v1602_v29, %v2345_v21  ;;  %v1588_v58 = vsel %vm161_vm8, %v1587_v52, %v1569_v42  ;;  %v1557_v59 = vrot.slane %v1552_v55, 4  ;;  %v1559_v4 = vrot.slane %v1540_v50, 4 }
 0x4ef   :  { %v1594_v60 = vperm.slane %v1588_v58, %v2345_v21  ;;  %v1617_v2 = vrot.slane %v1598_v22, 4  ;;  %v1562_v7 = vsel %vm161_vm8, %v1561_v53, %v1544_v47  ;;  %v1600_v9 = vsel %vm161_vm8, %v1599_v0, %v1580_v38 }
 0x4f0   :  { %v1615_v1 = vrot.slane %v1610_v23, 4  ;;  %v1558_v54 = vsel %vm161_vm8, %v1557_v59, %v1540_v50  ;;  %v1564_v17 = vsel %vm161_vm8, %v1556_v41, %v1563_v63  ;;  %v1606_v18 = vperm.slane %v1600_v9, %v2345_v21  ;;  %v2054_v21 = vld [vmem:[%s2925_s4 + $0x8] sm:$0xff]  ;;  %v2195_v41 = vld [vmem:[%s2921_s0] sm:$0xff] }
 0x4f1   :  { %v1613_v12 = vrot.slane %v1594_v60, 4  ;;  %v1618_v61 = vsel %vm161_vm8, %v1610_v23, %v1617_v2  ;;  %v1560_v56 = vsel %vm161_vm8, %v1552_v55, %v1559_v4  ;;  %1677 = vmatpush.bf16.msra.mxu1 %v2054_v21  ;;  %v2056_v23 = vld [vmem:[%s2928_s7 + $0x8] sm:$0xff]  ;;  %v2055_v63 = vld [vmem:[%s2928_s7] sm:$0xff]  ;;  %s1960_s7 = sshll.u32 %s2234_s24, 4  ;;  %s1961_s7 = int_to_ptr.vmem [resolvable:$true] %s1960_s7 }
 0x4f2   :  { %v1616_v16 = vsel %vm161_vm8, %v1615_v1, %v1598_v22  ;;  %v2138_v19 = vpack.i.bf16 %v1618_v61, %v1564_v17  ;;  %v1611_v62 = vrot.slane %v1606_v18, 4  ;;  %1773 = vmatpush.bf16.msra.mxu2 %v2056_v23 }
 0x4f3   :  { %v2133_v34 = vpack.i.bf16 %v1616_v16, %v1562_v7  ;;  %v1614_v3 = vsel %vm161_vm8, %v1606_v18, %v1613_v12 }
 0x4f4   :  { %2139 = vrot.lane.b32.xlu0 %v2138_v19, %s2232_s13  ;;  %v2128_v6 = vpack.i.bf16 %v1614_v3, %v1560_v56  ;;  %v1612_v20 = vsel %vm161_vm8, %v1611_v62, %v1594_v60  ;;  %vm1648_vm8 = vcmask 195584   ;;  %v2146_v62 = vld [vmem:[%s2927_s6] ss:$0 sm:$0xff] }
 0x4f5   :  { %2134 = vrot.lane.b32.xlu2 %v2133_v34, %s2231_s12  ;;  %1678 = vmatpush.bf16.msra.mxu1 %v2053_v5 }
 0x4f6   :  { %2129 = vrot.lane.b32.xlu1 %v2128_v6, %s2233_s14  ;;  %1774 = vmatpush.bf16.msra.mxu2 %v2055_v63 }
 0x54f   :  { %v2135_v13 = vpop.permute.xlu2 %2134 }
 0x550   :  { %v2137_v11 = vunpack.i.h.bf16 %v2135_v13  ;;  %v2136_v27 = vunpack.i.l.bf16 %v2135_v13 }
 0x566   :  { %v2140_v24 = vpop.permute.xlu0 %2139 }
 0x567   :  { %v2142_v30 = vunpack.i.h.bf16 %v2140_v24  ;;  %v2141_v31 = vunpack.i.l.bf16 %v2140_v24  ;;  %v2147_v24 = vld [vmem:[%s2929_s8] ss:$0 sm:$0xff] }
 0x568   :  { %v2130_v14 = vpop.permute.xlu1 %2129 }
 0x569   :  { %v2132_v25 = vunpack.i.h.bf16 %v2130_v14  ;;  %v2131_v26 = vunpack.i.l.bf16 %v2130_v14 }
 0x56b   :  { %v1643_v32 = vsel %vm893_vm9, %v1558_v54, %v2131_v26  ;;  %v1644_v33 = vsel %vm893_vm9, %v1612_v20, %v2132_v25 }
 0x56c   :  { %v1646_v36 = vsel %vm1645_vm2, %v1643_v32, %v2136_v27  ;;  %v1647_v15 = vsel %vm1645_vm2, %v1644_v33, %v2137_v11  ;;  %v2064_v11 = vld [vmem:[%s2930_s9 + $0x38] sm:$0xff]  ;;  %v2063_v32 = vld [vmem:[%s2930_s9 + $0x30] sm:$0xff] }
 0x56d   :  { %v1649_v35 = vsel %vm1648_vm8, %v1646_v36, %v2141_v31  ;;  %v1650_v37 = vsel %vm1648_vm8, %v1647_v15, %v2142_v30  ;;  %1938 = vmatpush.bf16.msra.mxu3 %v2064_v11 }
 0x56e   :  { %v1651_v38 = vpack.c.bf16 %v1650_v37, %v1649_v35 }
 0x570   :  { %2007 = vmatmul.msk.bf16.vlgmr.msra.gmra.mxu1 %vm44_vm0, %v1651_v38 }
 0x571   :  { %1939 = vmatpush.bf16.msra.mxu3 %v2063_v32 }
 0x5ed   :  { %v1680_v39 = vpop.f32.mrf.mxu1 }
 0x5ee   :  { %v2833_v42 = vadd.f32 %v2195_v41, %v1680_v39  ;;  %v2062_v39 = vld [vmem:[%s2930_s9 + $0x28] sm:$0xff] }
 0x5ef   :  { %1940 = vmatpush.bf16.msra.mxu3 %v2062_v39 }
 0x5f0   :  { %v1689_v43 = vsel %vm44_vm0, %v2833_v42, 0.0 }
 0x5f1   :  { %1690 = vadd.xlane.f32.xlu1 %v1689_v43 }
 0x5f5   :  { %v1682_v44 = vpop.f32.mrf.mxu1 }
 0x5f6   :  { %v2840_v45 = vadd.f32 %v2196_v40, %v1682_v44 }
 0x5f8   :  { %v1692_v46 = vsel %vm44_vm0, %v2840_v45, 0.0 }
 0x5f9   :  { %1693 = vadd.xlane.f32.xlu0 %v1692_v46 }
 0x664   :  { %v1691_v47 = vpop.xlane.xlu1 %1690 }
 0x665   :  { %v1695_v28 = vmul.f32 %v1691_v47, %v2304_v10  ;;  %v2061_v47 = vld [vmem:[%s2930_s9 + $0x20] sm:$0xff] }
 0x666   :  { %1941 = vmatpush.bf16.msra.mxu3 %v2061_v47 }
 0x667   :  { %v1697_v48 = vsub.f32 %v2833_v42, %v1695_v28 }
 0x669   :  { %v1699_v49 = vmul.f32 %v1697_v48, %v1697_v48 }
 0x66b   :  { %v1701_v8 = vsel %vm44_vm0, %v1699_v49, 0.0 }
 0x66c   :  { %1702 = vadd.xlane.f32.xlu2 %v1701_v8  ;;  %v1694_v50 = vpop.xlane.xlu0 %1693 }
 0x66d   :  { %v1696_v51 = vmul.f32 %v1694_v50, %v2304_v10 }
 0x66f   :  { %v1698_v52 = vsub.f32 %v2840_v45, %v1696_v51 }
 0x671   :  { %v1700_v53 = vmul.f32 %v1698_v52, %v1698_v52 }
 0x673   :  { %v1704_v57 = vsel %vm44_vm0, %v1700_v53, 0.0  ;;  %v2060_v53 = vld [vmem:[%s2930_s9 + $0x18] sm:$0xff] }
 0x674   :  { %1705 = vadd.xlane.f32.xlu1 %v1704_v57  ;;  %1942 = vmatpush.bf16.msra.mxu3 %v2060_v53 }
 0x6df   :  { %v1703_v29 = vpop.xlane.xlu2 %1702 }
 0x6e0   :  { %v1707_v55 = vmul.f32 %v1703_v29, %v2304_v10 }
 0x6e2   :  { %v1709_v22 = vadd.f32 1e-05, %v1707_v55 }
 0x6e4   :  { %2187 = vrsqrt.f32 %v1709_v22  ;;  %vm1717_vm3 = vweird.f32 %v1709_v22 }
 0x6e7   :  { %v1706_v58 = vpop.xlane.xlu1 %1705 }
 0x6e8   :  { %v1708_v59 = vmul.f32 %v1706_v58, %v2304_v10  ;;  %v2145_v10 = vld [vmem:[%s2926_s5] ss:$0 sm:$0xff] }
 0x6ea   :  { %v2188_v60 = vpop.eup %2187  ;;  %v1710_v0 = vadd.f32 1e-05, %v1708_v59  ;;  %v2059_v59 = vld [vmem:[%s2930_s9 + $0x10] sm:$0xff] }
 0x6eb   :  { %v1712_v1 = vmul.f32 %v2188_v60, %v1709_v22  ;;  %vm1718_vm9 = vweird.f32 %v2188_v60  ;;  %1943 = vmatpush.bf16.msra.mxu3 %v2059_v59 }
 0x6ec   :  { %2189 = vrsqrt.f32 %v1710_v0  ;;  %vm1719_vm4 = vmor %vm1717_vm3, %vm1718_vm9  ;;  %vm1727_vm6 = vweird.f32 %v1710_v0 }
 0x6ed   :  { %v1713_v2 = vmul.f32 %v2188_v60, %v1712_v1 }
 0x6ef   :  { %v1714_v4 = vmul.f32 0.5, %v1713_v2 }
 0x6f1   :  { %v1715_v7 = vsub.f32 1.5, %v1714_v4 }
 0x6f2   :  { %v2190_v9 = vpop.eup %2189 }
 0x6f3   :  { %v1716_v12 = vmul.f32 %v2188_v60, %v1715_v7  ;;  %v1722_v54 = vmul.f32 %v2190_v9, %v1710_v0  ;;  %vm1728_vm5 = vweird.f32 %v2190_v9 }
 0x6f4   :  { %vm1729_vm7 = vmor %vm1727_vm6, %vm1728_vm5 }
 0x6f5   :  { %v1723_v16 = vmul.f32 %v2190_v9, %v1722_v54  ;;  %v1720_v17 = vsel %vm1719_vm4, %v2188_v60, %v1716_v12 }
 0x6f6   :  { %v1731_v34 = vmul.f32 %v1720_v17, %v1697_v48 }
 0x6f7   :  { %v1724_v61 = vmul.f32 0.5, %v1723_v16  ;;  %v2057_v16 = vld [vmem:[%s2930_s9] sm:$0xff] }
 0x6f8   :  { %v1736_v3 = vmul.f32 %v2145_v10, %v1731_v34 }
 0x6f9   :  { %v1725_v18 = vsub.f32 1.5, %v1724_v61 }
 0x6fa   :  { %v1741_v21 = vadd.f32 %v2146_v62, %v1736_v3 }
 0x6fb   :  { %v1726_v19 = vmul.f32 %v2190_v9, %v1725_v18 }
 0x6fd   :  { %v1730_v56 = vsel %vm1729_vm7, %v2190_v9, %v1726_v19  ;;  %v2058_v9 = vld [vmem:[%s2930_s9 + $0x8] sm:$0xff] }
 0x6fe   :  { %v1732_v6 = vmul.f32 %v1730_v56, %v1698_v52  ;;  %1944 = vmatpush.bf16.msra.mxu3 %v2058_v9 }
 0x700   :  { %v1737_v20 = vmul.f32 %v2145_v10, %v1732_v6 }
 0x702   :  { %v1742_v5 = vadd.f32 %v2146_v62, %v1737_v20  ;;  %1945 = vmatpush.bf16.msra.mxu3 %v2057_v16 }
 0x704   :  { %v1743_v13 = vpack.c.bf16 %v1742_v5, %v1741_v21 }
 0x706   :  { %2016 = vmatmul.msk.bf16.vlgmr.msra.gmra.mxu2 %vm44_vm0, %v1743_v13 }
 0x789   :  { %v1776_v14 = vpop.f32.mrf.mxu2 }
 0x78a   :  { %v2868_v25 = vadd.f32 %v2147_v24, %v1776_v14 }
 0x78c   :  { %v2871_v26 = vmul.f32 0.70710677, %v2868_v25 }
 0x78e   :  { %v1785_v27 = vmul.f32 %v2871_v26, %v2871_v26 }
 0x790   :  { %v1786_v30 = vmin.f32 %v1785_v27, 16.0 }
 0x791   :  { %v1778_v31 = vpop.f32.mrf.mxu2 }
 0x792   :  { %v1787_v33 = vmul.f32 2.1237322e-06, %v1786_v30  ;;  %v1798_v36 = vmul.f32 3.8918573e-05, %v1786_v30  ;;  %v2881_v15 = vadd.f32 %v2147_v24, %v1778_v31 }
 0x794   :  { %v1788_v35 = vadd.f32 0.00028619796, %v1787_v33  ;;  %v1799_v37 = vadd.f32 0.001143296, %v1798_v36  ;;  %v2884_v38 = vmul.f32 0.70710677, %v2881_v15 }
 0x796   :  { %v1800_v41 = vmul.f32 %v1799_v37, %v1786_v30  ;;  %v1825_v43 = vmul.f32 %v2884_v38, %v2884_v38  ;;  %v1789_v44 = vmul.f32 %v1788_v35, %v1786_v30 }
 0x798   :  { %v1801_v40 = vadd.f32 0.014752088, %v1800_v41  ;;  %v1826_v46 = vmin.f32 %v1825_v43, 16.0  ;;  %v1790_v8 = vadd.f32 0.0036580483, %v1789_v44 }
 0x79a   :  { %v1802_v28 = vmul.f32 %v1801_v40, %v1786_v30  ;;  %v1827_v48 = vmul.f32 2.1237322e-06, %v1826_v46  ;;  %v1838_v49 = vmul.f32 3.8918573e-05, %v1826_v46  ;;  %v1791_v22 = vmul.f32 %v1790_v8, %v1786_v30 }
 0x79c   :  { %v1803_v50 = vadd.f32 0.112945676, %v1802_v28  ;;  %v1828_v51 = vadd.f32 0.00028619796, %v1827_v48  ;;  %v1839_v52 = vadd.f32 0.001143296, %v1838_v49 }
 0x79d   :  { %v1792_v1 = vadd.f32 0.05243302, %v1791_v22  ;;  %v2148_v22 = vld [vmem:[%s2931_s10] ss:$0 sm:$0xff]  ;;  %s2235_s10 = smov 128  }
 0x79e   :  { %v1804_v57 = vmul.f32 %v1803_v50, %v1786_v30  ;;  %v1829_v29 = vmul.f32 %v1828_v51, %v1826_v46  ;;  %v1840_v55 = vmul.f32 %v1839_v52, %v1826_v46  ;;  %v1781_v51 = vmul.f32 0.5, %v2868_v25 }
 0x79f   :  { %v1793_v54 = vmul.f32 %v1792_v1, %v1786_v30  ;;  %v1782_v52 = vmul.f32 0.5, %v2881_v15 }
 0x7a0   :  { %v1805_v23 = vadd.f32 0.4994258, %v1804_v57  ;;  %v1830_v63 = vadd.f32 0.0036580483, %v1829_v29  ;;  %v1841_v58 = vadd.f32 0.014752088, %v1840_v55 }
 0x7a1   :  { %v1794_v34 = vadd.f32 0.18741608, %v1793_v54 }
 0x7a2   :  { %v1806_v60 = vmul.f32 %v1805_v23, %v1786_v30  ;;  %v1842_v0 = vmul.f32 %v1841_v58, %v1826_v46  ;;  %v1831_v4 = vmul.f32 %v1830_v63, %v1826_v46 }
 0x7a3   :  { %v1795_v6 = vmul.f32 %v1794_v34, %v1786_v30 }
 0x7a4   :  { %v1807_v2 = vadd.f32 1.0, %v1806_v60  ;;  %v1843_v7 = vadd.f32 0.112945676, %v1842_v0  ;;  %v1832_v17 = vadd.f32 0.05243302, %v1831_v4 }
 0x7a5   :  { %v1796_v14 = vadd.f32 1.1283791, %v1795_v6 }
 0x7a6   :  { %2191 = vrcp.f32 %v1807_v2  ;;  %v1844_v12 = vmul.f32 %v1843_v7, %v1826_v46  ;;  %v1833_v56 = vmul.f32 %v1832_v17, %v1826_v46  ;;  %v1819_v21 = vand.u32 2147483648, %v1807_v2 }
 0x7a7   :  { %v1817_v13 = vand.u32 2147483647, %v1807_v2  ;;  %vm1813_vm11 = vweird.f32 %v1807_v2  ;;  %v1797_v35 = vmul.f32 %v1796_v14, %v2871_v26 }
 0x7a8   :  { %v1845_v61 = vadd.f32 0.4994258, %v1844_v12  ;;  %v1834_v5 = vadd.f32 0.18741608, %v1833_v56  ;;  %v1820_v31 = vor.u32 1.1754944e-38, %v1819_v21 }
 0x7a9   :  { %vm1818_vm13 = vcmp.eq.f32.partialorder %v1817_v13, 8.507059e+37 }
 0x7aa   :  { %v1846_v18 = vmul.f32 %v1845_v61, %v1826_v46  ;;  %v1835_v32 = vmul.f32 %v1834_v5, %v1826_v46 }
 0x7ac   :  { %v2192_v10 = vpop.eup %2191  ;;  %v1847_v62 = vadd.f32 1.0, %v1846_v18  ;;  %v1836_v30 = vadd.f32 1.1283791, %v1835_v32 }
 0x7ad   :  { %v1809_v19 = vmul.f32 %v2192_v10, %v1807_v2  ;;  %vm1814_vm10 = vweird.f32 %v2192_v10 }
 0x7ae   :  { %2193 = vrcp.f32 %v1847_v62  ;;  %vm1815_vm12 = vmor %vm1813_vm11, %vm1814_vm10  ;;  %v1859_v39 = vand.u32 2147483648, %v1847_v62  ;;  %v1857_v44 = vand.u32 2147483647, %v1847_v62  ;;  %vm1853_vm15 = vweird.f32 %v1847_v62 }
 0x7af   :  { %v1810_v3 = vsub.f32 1.0, %v1809_v19  ;;  %v1837_v48 = vmul.f32 %v1836_v30, %v2884_v38 }
 0x7b0   :  { %v1860_v47 = vor.u32 1.1754944e-38, %v1859_v39  ;;  %vm1858_vm2 = vcmp.eq.f32.partialorder %v1857_v44, 8.507059e+37 }
 0x7b1   :  { %v1811_v20 = vmul.f32 %v2192_v10, %v1810_v3 }
 0x7b3   :  { %v1812_v24 = vadd.f32 %v2192_v10, %v1811_v20 }
 0x7b4   :  { %v2194_v11 = vpop.eup %2193 }
 0x7b5   :  { %v1816_v27 = vsel %vm1815_vm12, %v2192_v10, %v1812_v24  ;;  %v1849_v33 = vmul.f32 %v2194_v11, %v1847_v62  ;;  %vm1854_vm14 = vweird.f32 %v2194_v11 }
 0x7b6   :  { %v1821_v36 = vsel %vm1818_vm13, %v1820_v31, %v1816_v27  ;;  %vm1855_vm1 = vmor %vm1853_vm15, %vm1854_vm14 }
 0x7b7   :  { %v1850_v37 = vsub.f32 1.0, %v1849_v33  ;;  %v1822_v41 = vmul.f32 %v1821_v36, %v1797_v35 }
 0x7b9   :  { %v1851_v43 = vmul.f32 %v2194_v11, %v1850_v37  ;;  %v2017_v28 = vclamps-f32 %v1822_v41, 1.0 }
 0x7bb   :  { %v1852_v40 = vadd.f32 %v2194_v11, %v1851_v43  ;;  %v1865_v50 = vadd.f32 1.0, %v2017_v28 }
 0x7bd   :  { %v1856_v46 = vsel %vm1855_vm1, %v2194_v11, %v1852_v40  ;;  %v1867_v57 = vmul.f32 %v1865_v50, %v1781_v51 }
 0x7be   :  { %v1861_v49 = vsel %vm1858_vm2, %v1860_v47, %v1856_v46 }
 0x7bf   :  { %v1862_v8 = vmul.f32 %v1861_v49, %v1837_v48 }
 0x7c1   :  { %v2018_v26 = vclamps-f32 %v1862_v8, 1.0 }
 0x7c3   :  { %v1866_v53 = vadd.f32 1.0, %v2018_v26 }
 0x7c5   :  { %v1868_v29 = vmul.f32 %v1866_v53, %v1782_v52 }
 0x7c7   :  { %v1869_v55 = vpack.c.bf16 %v1868_v29, %v1867_v57 }
 0x7c9   :  { %1946 = vmatmul.bf16.vlgmr.msra.gmra.mxu3 %v1869_v55 }
 0x84c   :  { %v1947_v38 = vpop.f32.mrf.mxu3 }
 0x84d   :  { %v1948_v23 = vadd.f32 %v2148_v22, %v1947_v38 }
 0x84f   :  { %v1952_v63 = vadd.f32 %v1948_v23, %v2833_v42 }
 0x851   :  { %1954 = vst.msk [vmem:[#allocation2] sm:$0xff] %vm44_vm0, %v1952_v63 }
 0x854   :  { %v1949_v25 = vpop.f32.mrf.mxu3 }
 0x855   :  { %v1950_v15 = vadd.f32 %v2148_v22, %v1949_v25 }
 0x857   :  { %v1953_v58 = vadd.f32 %v1950_v15, %v2840_v45 }
 0x859   :  { %1955 = vst.msk [vmem:[#allocation2 + $0x8] sm:$0xff] %vm44_vm0, %v1953_v58 }
 0x85a   :  { %1968 = dma.vmem_to_hbm [thread:$0]  %s1961_s7, 256, %s1963_s23, [#allocation3], %s2235_s10, %s2235_s10, %s2233_s14  }
 0x85b   :  { %2221 = dma.done.wait [#allocation3], 256  }
 0x85c   :  { %2222 = vsyncadd [#allocation3], 4294967040 }
 0x85d   :  { %1973 = vsyncpa [#allocation3], 1 }

</bundles_post_ra>
